<compile_context>
chip_gen: v7x
topology: tpu7x:2x2x1
jax: 0.10.0
libtpu: 0.0.40
codegen_flags: <defaults>
</compile_context>

<pallas_src>
import jax
import jax.numpy as jnp
from jax.experimental import pallas as pl
from jax.experimental.pallas import tpu as pltpu


# ----------------------------------------------------------------------------
# Kernel 1: frame encoder (per-frame Linear + ReLU, masked mean over valid frames)
# ----------------------------------------------------------------------------
def _frame_encoder_kernel(len_ref, x_ref, w_ref, b_ref, ctx_ref, acc_ref):
    # grid = (B//tb, T//tt); the frame axis t is the LAST (reduction) grid axis.
    # With the default tt == T this is a single reduction step per batch tile.
    t = pl.program_id(1)
    nt = pl.num_programs(1)

    @pl.when(t == 0)
    def _init():
        acc_ref[...] = jnp.zeros_like(acc_ref)

    x = x_ref[...]                                            # (tb, tt, F) f32
    tb, tt, f = x.shape
    # bf16 operands on the MXU, f32 accumulate.
    h = jnp.dot(x.reshape(tb * tt, f).astype(jnp.bfloat16), w_ref[...],
                preferred_element_type=jnp.float32)
    h = jnp.maximum(h + b_ref[...], 0.0)                      # Linear + ReLU (f32 VPU)
    h = h.reshape(tb, tt, -1)

    # Valid-frame mask (mask BEFORE the sum so padded frames contribute nothing).
    frame_idx = jax.lax.broadcasted_iota(jnp.int32, (tb, tt), 1) + t * tt
    mask = (frame_idx < len_ref[...]).astype(jnp.float32)     # (tb, tt) vs (tb, 1) lengths
    acc_ref[...] += jnp.sum(h * mask[:, :, None], axis=1)     # masked sum over frames

    @pl.when(t == nt - 1)
    def _finalize():
        denom = jnp.maximum(len_ref[...].astype(jnp.float32), 1.0)   # true per-example length
        ctx_ref[...] = (acc_ref[...] / denom).astype(ctx_ref.dtype)


def frame_encoder(videoframes, videoframes_lengths, w_enc, b_enc, *, tb=8, tt=None):
    B, T, F = videoframes.shape
    E = w_enc.shape[1]
    if tt is None:
        tt = T                     # whole (tb*T, F) slab in one MXU call at these sizes
    assert B % tb == 0 and T % tt == 0
    lengths2d = videoframes_lengths.astype(jnp.int32).reshape(B, 1)
    return pl.pallas_call(
        _frame_encoder_kernel,
        out_shape=jax.ShapeDtypeStruct((B, E), jnp.float32),
        grid=(B // tb, T // tt),
        in_specs=[
            pl.BlockSpec((tb, 1), lambda b, t: (b, 0)),          # lengths (per batch tile)
            pl.BlockSpec((tb, tt, F), lambda b, t: (b, t, 0)),   # frames (f32 in HBM)
            pl.BlockSpec((F, E), lambda b, t: (0, 0)),           # encoder weight, bf16 resident
            pl.BlockSpec((1, E), lambda b, t: (0, 0)),           # encoder bias, f32
        ],
        out_specs=pl.BlockSpec((tb, E), lambda b, t: (b, 0)),    # constant over t => accumulator
        scratch_shapes=[pltpu.VMEM((tb, E), jnp.float32)],
        compiler_params=pltpu.CompilerParams(
            dimension_semantics=("parallel", "arbitrary")),
    )(lengths2d, videoframes, w_enc.astype(jnp.bfloat16), b_enc.astype(jnp.float32))


# ----------------------------------------------------------------------------
# Kernel 2: caption decoder (GRU with video context every step + vocab proj + log_softmax)
# ----------------------------------------------------------------------------
def _caption_decoder_kernel(words_ref, ctx_ref, w_iw_ref, w_ic_ref, b_i_ref,
                            w_h_ref, b_h_ref, w_v_ref, b_v_ref,
                            out_ref, h_ref, ctx_ih_ref, logp_ref):
    # grid = (B//tb, S); b outer ("parallel"), s inner ("arbitrary").
    s = pl.program_id(1)
    ns = pl.num_programs(1)
    hdim = h_ref.shape[-1]

    # Per batch-tile init + hoisted context->gates matmul (constant across all S steps,
    # replaces concatenating [word, ctx] at every step).
    @pl.when(s == 0)
    def _init():
        h_ref[...] = jnp.zeros_like(h_ref)
        ctx_ih_ref[...] = (
            jnp.dot(ctx_ref[...].astype(jnp.bfloat16), w_ic_ref[...],
                    preferred_element_type=jnp.float32) + b_i_ref[...])

    # One GRU step per caption position. bf16 operands on the MXU, all gate math in f32.
    x = words_ref[...].astype(jnp.bfloat16)                       # (tb, D)
    h = h_ref[...]                                                # (tb, H) f32 carry
    gi = jnp.dot(x, w_iw_ref[...], preferred_element_type=jnp.float32) + ctx_ih_ref[...]
    gh = jnp.dot(h.astype(jnp.bfloat16), w_h_ref[...],
                 preferred_element_type=jnp.float32) + b_h_ref[...]
    r = jax.nn.sigmoid(gi[:, :hdim] + gh[:, :hdim])
    z = jax.nn.sigmoid(gi[:, hdim:2 * hdim] + gh[:, hdim:2 * hdim])
    n = jnp.tanh(gi[:, 2 * hdim:] + r * gh[:, 2 * hdim:])
    h_new = (1.0 - z) * n + z * h
    h_ref[...] = h_new

    # Vocab projection against the resident bf16 (H, V) weight, f32 logits + log_softmax.
    logits = jnp.dot(h_new.astype(jnp.bfloat16), w_v_ref[...],
                     preferred_element_type=jnp.float32) + b_v_ref[...]       # (tb, V) f32
    m = jnp.max(logits, axis=-1, keepdims=True)                               # XLU reduce
    lse = m + jnp.log(jnp.sum(jnp.exp(logits - m), axis=-1, keepdims=True))   # EUP exp/log
    logp_ref[:, s, :] = logits - lse                # f32 scratch row for this caption step

    # Single full-block lane-dense store of the whole (tb, S, V) slab (cast to out dtype here).
    @pl.when(s == ns - 1)
    def _store():
        out_ref[...] = logp_ref[...].astype(out_ref.dtype)


def caption_decoder(wordvecs_sbd, ctx, params, *, tb=8, out_dtype=jnp.bfloat16):
    # out_dtype defaults to bf16 to halve the (B,S,V) HBM writeback; softmax math stays f32.
    S, B, D = wordvecs_sbd.shape
    E = ctx.shape[1]
    H = params["w_hh"].shape[0]
    V = params["w_vocab"].shape[1]
    assert B % tb == 0
    bf16 = jnp.bfloat16

    return pl.pallas_call(
        _caption_decoder_kernel,
        out_shape=jax.ShapeDtypeStruct((B, S, V), out_dtype),
        grid=(B // tb, S),
        in_specs=[
            pl.BlockSpec((None, tb, D), lambda b, s: (s, b, 0)),   # word vectors, one step slab
            pl.BlockSpec((tb, E), lambda b, s: (b, 0)),            # video context (f32)
            pl.BlockSpec((D, 3 * H), lambda b, s: (0, 0)),         # W_i (word part), bf16 resident
            pl.BlockSpec((E, 3 * H), lambda b, s: (0, 0)),         # W_i (ctx part), bf16 resident
            pl.BlockSpec((1, 3 * H), lambda b, s: (0, 0)),         # b_i (f32)
            pl.BlockSpec((H, 3 * H), lambda b, s: (0, 0)),         # W_h, bf16 resident
            pl.BlockSpec((1, 3 * H), lambda b, s: (0, 0)),         # b_h (f32)
            pl.BlockSpec((H, V), lambda b, s: (0, 0)),             # W_vocab, bf16 resident (once)
            pl.BlockSpec((1, V), lambda b, s: (0, 0)),             # b_vocab (f32)
        ],
        # Output block constant over the s axis -> (tb, S, V) slab stays VMEM-resident for the
        # whole caption and is written back to HBM once per batch tile, already in (B, S, V).
        out_specs=pl.BlockSpec((tb, S, V), lambda b, s: (b, 0, 0)),
        scratch_shapes=[
            pltpu.VMEM((tb, H), jnp.float32),        # GRU hidden state, carried across S
            pltpu.VMEM((tb, 3 * H), jnp.float32),    # hoisted ctx @ W_i_ctx + b_i
            pltpu.VMEM((tb, S, V), jnp.float32),     # f32 per-step log-probs before final cast
        ],
        compiler_params=pltpu.CompilerParams(
            dimension_semantics=("parallel", "arbitrary")),
    )(wordvecs_sbd, ctx,
      params["w_ih_word"].astype(bf16), params["w_ih_ctx"].astype(bf16),
      params["b_ih"].astype(jnp.float32),
      params["w_hh"].astype(bf16), params["b_hh"].astype(jnp.float32),
      params["w_vocab"].astype(bf16), params["b_vocab"].astype(jnp.float32))


# ----------------------------------------------------------------------------
# STAL forward (training path)
# ----------------------------------------------------------------------------
def stal_forward(params, videoframes, videoframes_lengths, inputwords):
    """Training-path forward of STAL: returns (B, S, V) log-probabilities."""
    # Glue: pretrained word-embedding gather done directly in step-major (S, B, D) order so
    # each decoder grid step DMAs one contiguous lane-dense (tb, D) slab (no extra transpose).
    wordvecs_sbd = jnp.take(params["embeddings"], inputwords.T, axis=0)   # (S, B, D)
    ctx = frame_encoder(videoframes, videoframes_lengths,
                        params["w_enc"], params["b_enc"])                 # (B, E)
    return caption_decoder(wordvecs_sbd, ctx, params)                     # (B, S, V)
    # TODO(synk): inference() greedy decode (eval path of STAL.forward) is not implemented.


# ----------------------------------------------------------------------------
# Pure-JAX reference (for correctness check)
# ----------------------------------------------------------------------------
def _mm(a, b):
    return jnp.dot(a, b, precision=jax.lax.Precision.HIGHEST)


def stal_reference(params, videoframes, videoframes_lengths, inputwords):
    B, T, F = videoframes.shape
    wordvecs = params["embeddings"][inputwords]                       # (B, S, D)
    h = jnp.einsum("btf,fe->bte", videoframes, params["w_enc"],
                   precision=jax.lax.Precision.HIGHEST) + params["b_enc"]
    h = jax.nn.relu(h)
    mask = (jnp.arange(T)[None, :] < videoframes_lengths[:, None]).astype(jnp.float32)
    ctx = (h * mask[:, :, None]).sum(axis=1) / jnp.maximum(
        videoframes_lengths.astype(jnp.float32), 1.0)[:, None]

    Hd = params["w_hh"].shape[0]
    Bsz, S, _ = wordvecs.shape
    hstate = jnp.zeros((Bsz, Hd), jnp.float32)
    gi_ctx = _mm(ctx, params["w_ih_ctx"]) + params["b_ih"]
    outs = []
    for s in range(S):
        x = wordvecs[:, s]
        gi = _mm(x, params["w_ih_word"]) + gi_ctx
        gh = _mm(hstate, params["w_hh"]) + params["b_hh"]
        r = jax.nn.sigmoid(gi[:, :Hd] + gh[:, :Hd])
        z = jax.nn.sigmoid(gi[:, Hd:2 * Hd] + gh[:, Hd:2 * Hd])
        n = jnp.tanh(gi[:, 2 * Hd:] + r * gh[:, 2 * Hd:])
        hstate = (1.0 - z) * n + z * hstate
        logits = _mm(hstate, params["w_vocab"]) + params["b_vocab"]
        outs.append(jax.nn.log_softmax(logits, axis=-1))
    return jnp.stack(outs, axis=1)                                    # (B, S, V)


# ----------------------------------------------------------------------------
if __name__ == "__main__":
    key = jax.random.PRNGKey(0)
    B, T, F = 8, 16, 128     # batch, video frames, frame-feature dim
    E = 128                  # frame-encoder output (video context) dim
    D = 128                  # word embedding dim (decoder_rnn_word_dim)
    H = 128                  # GRU hidden dim (decoder_rnn_hidden_dim)
    V = 512                  # vocabulary size
    S = 8                    # caption length

    ks = jax.random.split(key, 12)
    sc = 0.08
    params = {
        "embeddings": jax.random.normal(ks[0], (V, D), jnp.float32) * sc,
        "w_enc":      jax.random.normal(ks[1], (F, E), jnp.float32) * sc,
        "b_enc":      jax.random.normal(ks[2], (1, E), jnp.float32) * sc,
        "w_ih_word":  jax.random.normal(ks[3], (D, 3 * H), jnp.float32) * sc,
        "w_ih_ctx":   jax.random.normal(ks[4], (E, 3 * H), jnp.float32) * sc,
        "b_ih":       jax.random.normal(ks[5], (1, 3 * H), jnp.float32) * sc,
        "w_hh":       jax.random.normal(ks[6], (H, 3 * H), jnp.float32) * sc,
        "b_hh":       jax.random.normal(ks[7], (1, 3 * H), jnp.float32) * sc,
        "w_vocab":    jax.random.normal(ks[8], (H, V), jnp.float32) * sc,
        "b_vocab":    jax.random.normal(ks[9], (1, V), jnp.float32) * sc,
    }
    videoframes = jax.random.normal(ks[10], (B, T, F), jnp.float32)
    videoframes_lengths = jnp.array([16, 13, 9, 5, 16, 1, 7, 12], jnp.int32)
    inputwords = jax.random.randint(ks[11], (B, S), 0, V)

    out = jax.jit(stal_forward)(params, videoframes, videoframes_lengths, inputwords)
    out = jax.block_until_ready(out)

    ref = jax.jit(stal_reference)(params, videoframes, videoframes_lengths, inputwords)
    ref = jax.block_until_ready(ref)

    assert out.shape == (B, S, V)
    out_f32 = out.astype(jnp.float32)
    assert bool(jnp.isfinite(out_f32).all())
    # bf16 MXU operands + bf16 output store (log-probs ~ -6.2 for V=512) -> bf16-appropriate tol.
    assert bool(jnp.allclose(out_f32, ref, atol=3e-2, rtol=1e-2)), \
        float(jnp.max(jnp.abs(out_f32 - ref)))
    print("KERNEL_OK")
</pallas_src>

<mosaic_0001>
module attributes {stable_mosaic.version = 11 : i64} {
  func.func @_frame_encoder_kernel(%arg0: i32, %arg1: i32, %arg2: memref<8x1xi32, #tpu.memory_space<vmem>>, %arg3: memref<8x16x128xf32, #tpu.memory_space<vmem>>, %arg4: memref<128x128xbf16, #tpu.memory_space<vmem>>, %arg5: memref<1x128xf32, #tpu.memory_space<vmem>>, %arg6: memref<8x128xf32, #tpu.memory_space<vmem>>, %arg7: memref<8x128xf32, #tpu.memory_space<vmem>>) attributes {dimension_semantics = [#tpu.dimension_semantics<parallel>, #tpu.dimension_semantics<arbitrary>], iteration_bounds = array<i64: 1, 1>, scalar_prefetch = 0 : i64, scratch_operands = 1 : i64, tpu.core_type = #tpu.core_type<tc>, window_params = [{transform_indices = @transform_0, window_bounds = array<i64: 8, 1>}, {transform_indices = @transform_1, window_bounds = array<i64: 8, 16, 128>}, {pipeline_mode = #tpu.pipeline_mode<synchronous>, transform_indices = @transform_2, window_bounds = array<i64: 128, 128>}, {pipeline_mode = #tpu.pipeline_mode<synchronous>, transform_indices = @transform_3, window_bounds = array<i64: 1, 128>}, {transform_indices = @transform_4, window_bounds = array<i64: 8, 128>}]} {
    %c0_i32 = arith.constant 0 : i32
    %0 = arith.cmpi eq, %arg1, %c0_i32 : i32
    %1 = arith.extui %0 : i1 to i32
    %c0_i32_0 = arith.constant 0 : i32
    %2 = arith.cmpi ne, %1, %c0_i32_0 : i32
    scf.if %2 {
      %cst_17 = arith.constant 0.000000e+00 : f32
      %33 = vector.broadcast %cst_17 : f32 to vector<8x128xf32>
      %c0_18 = arith.constant 0 : index
      %c0_19 = arith.constant 0 : index
      %34 = vector.load %arg7[%c0_18, %c0_19] : memref<8x128xf32, #tpu.memory_space<vmem>>, vector<8x128xf32>
      tpu.vector_store %arg7[%c0_18, %c0_19], %33 {strides = array<i32>} : memref<8x128xf32, #tpu.memory_space<vmem>>, vector<8x128xf32>,
    } else {
    }
    %c0 = arith.constant 0 : index
    %c0_1 = arith.constant 0 : index
    %c0_2 = arith.constant 0 : index
    %3 = vector.load %arg3[%c0, %c0_1, %c0_2] : memref<8x16x128xf32, #tpu.memory_space<vmem>>, vector<8x16x128xf32>
    %4 = vector.shape_cast %3 : vector<8x16x128xf32> to vector<128x128xf32>
    %5 = arith.truncf %4 : vector<128x128xf32> to vector<128x128xbf16>
    %c0_3 = arith.constant 0 : index
    %c0_4 = arith.constant 0 : index
    %6 = vector.load %arg4[%c0_3, %c0_4] : memref<128x128xbf16, #tpu.memory_space<vmem>>, vector<128x128xbf16>
    %cst = arith.constant dense<0.000000e+00> : vector<128x128xf32>
    %7 = tpu.matmul %5, %6, %cst {dimension_numbers = #tpu.dot_dimension_numbers<[1], [0], [0], [1], [0, 0, 1, 1], [], []>} : vector<128x128xbf16>, vector<128x128xbf16>, vector<128x128xf32> -> vector<128x128xf32>
    %c0_5 = arith.constant 0 : index
    %c0_6 = arith.constant 0 : index
    %8 = vector.load %arg5[%c0_5, %c0_6] : memref<1x128xf32, #tpu.memory_space<vmem>>, vector<1x128xf32>
    %9 = vector.broadcast %8 : vector<1x128xf32> to vector<128x128xf32>
    %10 = arith.addf %7, %9 : vector<128x128xf32>
    %cst_7 = arith.constant 0.000000e+00 : f32
    %11 = vector.broadcast %cst_7 : f32 to vector<128x128xf32>
    %12 = arith.maximumf %10, %11 : vector<128x128xf32>
    %13 = vector.shape_cast %12 : vector<128x128xf32> to vector<8x16x128xf32>
    %14 = tpu.iota {dimensions = array<i32: 1>} : vector<8x16xi32>
    %c16_i32 = arith.constant 16 : i32
    %15 = arith.muli %arg1, %c16_i32 : i32
    %16 = vector.broadcast %15 : i32 to vector<8x16xi32>
    %17 = arith.addi %14, %16 : vector<8x16xi32>
    %c0_8 = arith.constant 0 : index
    %c0_9 = arith.constant 0 : index
    %18 = vector.load %arg2[%c0_8, %c0_9] : memref<8x1xi32, #tpu.memory_space<vmem>>, vector<8x1xi32>
    %19 = vector.broadcast %18 : vector<8x1xi32> to vector<8x16xi32>
    %20 = arith.cmpi slt, %17, %19 : vector<8x16xi32>
    %21 = arith.extui %20 : vector<8x16xi1> to vector<8x16xi32>
    %22 = arith.sitofp %21 : vector<8x16xi32> to vector<8x16xf32>
    %c0_10 = arith.constant 0 : index
    %c0_11 = arith.constant 0 : index
    %23 = vector.load %arg7[%c0_10, %c0_11] : memref<8x128xf32, #tpu.memory_space<vmem>>, vector<8x128xf32>
    %24 = vector.shape_cast %22 : vector<8x16xf32> to vector<8x16x1xf32>
    %25 = vector.broadcast %24 : vector<8x16x1xf32> to vector<8x16x128xf32>
    %26 = arith.mulf %13, %25 : vector<8x16x128xf32>
    %cst_12 = arith.constant dense<0.000000e+00> : vector<8x128xf32>
    %27 = vector.multi_reduction <add>, %26, %cst_12 [1] : vector<8x16x128xf32> to vector<8x128xf32>
    %28 = arith.addf %23, %27 : vector<8x128xf32>
    %c0_13 = arith.constant 0 : index
    %c0_14 = arith.constant 0 : index
    %29 = vector.load %arg7[%c0_13, %c0_14] : memref<8x128xf32, #tpu.memory_space<vmem>>, vector<8x128xf32>
    tpu.vector_store %arg7[%c0_13, %c0_14], %28 {strides = array<i32>} : memref<8x128xf32, #tpu.memory_space<vmem>>, vector<8x128xf32>,
    %c0_i32_15 = arith.constant 0 : i32
    %30 = arith.cmpi eq, %arg1, %c0_i32_15 : i32
    %31 = arith.extui %30 : i1 to i32
    %c0_i32_16 = arith.constant 0 : i32
    %32 = arith.cmpi ne, %31, %c0_i32_16 : i32
    scf.if %32 {
      %c0_17 = arith.constant 0 : index
      %c0_18 = arith.constant 0 : index
      %33 = vector.load %arg2[%c0_17, %c0_18] : memref<8x1xi32, #tpu.memory_space<vmem>>, vector<8x1xi32>
      %34 = arith.sitofp %33 : vector<8x1xi32> to vector<8x1xf32>
      %cst_19 = arith.constant 1.000000e+00 : f32
      %35 = vector.broadcast %cst_19 : f32 to vector<8x1xf32>
      %36 = arith.maximumf %34, %35 : vector<8x1xf32>
      %c0_20 = arith.constant 0 : index
      %c0_21 = arith.constant 0 : index
      %37 = vector.load %arg7[%c0_20, %c0_21] : memref<8x128xf32, #tpu.memory_space<vmem>>, vector<8x128xf32>
      %38 = vector.broadcast %36 : vector<8x1xf32> to vector<8x128xf32>
      %39 = arith.divf %37, %38 : vector<8x128xf32>
      %c0_22 = arith.constant 0 : index
      %c0_23 = arith.constant 0 : index
      %40 = vector.load %arg6[%c0_22, %c0_23] : memref<8x128xf32, #tpu.memory_space<vmem>>, vector<8x128xf32>
      tpu.vector_store %arg6[%c0_22, %c0_23], %39 {strides = array<i32>} : memref<8x128xf32, #tpu.memory_space<vmem>>, vector<8x128xf32>,
    } else {
    }
    return
  }
  func.func @transform_0(%arg0: i32, %arg1: i32) -> (i32, i32) {
    %c0_i32 = arith.constant 0 : i32
    %c0_i32_0 = arith.constant 0 : i32
    return %arg0, %c0_i32 : i32, i32
  }
  func.func @transform_1(%arg0: i32, %arg1: i32) -> (i32, i32, i32) {
    %c0_i32 = arith.constant 0 : i32
    %c0_i32_0 = arith.constant 0 : i32
    return %arg0, %arg1, %c0_i32 : i32, i32, i32
  }
  func.func @transform_2(%arg0: i32, %arg1: i32) -> (i32, i32) {
    %c0_i32 = arith.constant 0 : i32
    %c0_i32_0 = arith.constant 0 : i32
    %c0_i32_1 = arith.constant 0 : i32
    return %c0_i32, %c0_i32_0 : i32, i32
  }
  func.func @transform_3(%arg0: i32, %arg1: i32) -> (i32, i32) {
    %c0_i32 = arith.constant 0 : i32
    %c0_i32_0 = arith.constant 0 : i32
    %c0_i32_1 = arith.constant 0 : i32
    return %c0_i32, %c0_i32_0 : i32, i32
  }
  func.func @transform_4(%arg0: i32, %arg1: i32) -> (i32, i32) {
    %c0_i32 = arith.constant 0 : i32
    %c0_i32_0 = arith.constant 0 : i32
    return %arg0, %c0_i32 : i32, i32
  }
}

module attributes {stable_mosaic.version = 11 : i64} {
  func.func @_caption_decoder_kernel(%arg0: i32, %arg1: i32, %arg2: memref<1x8x128xf32, #tpu.memory_space<vmem>>, %arg3: memref<8x128xf32, #tpu.memory_space<vmem>>, %arg4: memref<128x384xbf16, #tpu.memory_space<vmem>>, %arg5: memref<128x384xbf16, #tpu.memory_space<vmem>>, %arg6: memref<1x384xf32, #tpu.memory_space<vmem>>, %arg7: memref<128x384xbf16, #tpu.memory_space<vmem>>, %arg8: memref<1x384xf32, #tpu.memory_space<vmem>>, %arg9: memref<128x512xbf16, #tpu.memory_space<vmem>>, %arg10: memref<1x512xf32, #tpu.memory_space<vmem>>, %arg11: memref<8x8x512xbf16, #tpu.memory_space<vmem>>, %arg12: memref<8x128xf32, #tpu.memory_space<vmem>>, %arg13: memref<8x384xf32, #tpu.memory_space<vmem>>, %arg14: memref<8x8x512xf32, #tpu.memory_space<vmem>>) attributes {dimension_semantics = [#tpu.dimension_semantics<parallel>, #tpu.dimension_semantics<arbitrary>], iteration_bounds = array<i64: 1, 8>, scalar_prefetch = 0 : i64, scratch_operands = 3 : i64, tpu.core_type = #tpu.core_type<tc>, window_params = [{transform_indices = @transform_0, window_bounds = array<i64: 1, 8, 128>}, {transform_indices = @transform_1, window_bounds = array<i64: 8, 128>}, {pipeline_mode = #tpu.pipeline_mode<synchronous>, transform_indices = @transform_2, window_bounds = array<i64: 128, 384>}, {pipeline_mode = #tpu.pipeline_mode<synchronous>, transform_indices = @transform_3, window_bounds = array<i64: 128, 384>}, {pipeline_mode = #tpu.pipeline_mode<synchronous>, transform_indices = @transform_4, window_bounds = array<i64: 1, 384>}, {pipeline_mode = #tpu.pipeline_mode<synchronous>, transform_indices = @transform_5, window_bounds = array<i64: 128, 384>}, {pipeline_mode = #tpu.pipeline_mode<synchronous>, transform_indices = @transform_6, window_bounds = array<i64: 1, 384>}, {pipeline_mode = #tpu.pipeline_mode<synchronous>, transform_indices = @transform_7, window_bounds = array<i64: 128, 512>}, {pipeline_mode = #tpu.pipeline_mode<synchronous>, transform_indices = @transform_8, window_bounds = array<i64: 1, 512>}, {transform_indices = @transform_9, window_bounds = array<i64: 8, 8, 512>}]} {
    %c0_i32 = arith.constant 0 : i32
    %0 = arith.cmpi eq, %arg1, %c0_i32 : i32
    %1 = arith.extui %0 : i1 to i32
    %c0_i32_0 = arith.constant 0 : i32
    %2 = arith.cmpi ne, %1, %c0_i32_0 : i32
    scf.if %2 {
      %cst_29 = arith.constant 0.000000e+00 : f32
      %68 = vector.broadcast %cst_29 : f32 to vector<8x128xf32>
      %c0_30 = arith.constant 0 : index
      %c0_31 = arith.constant 0 : index
      %69 = vector.load %arg12[%c0_30, %c0_31] : memref<8x128xf32, #tpu.memory_space<vmem>>, vector<8x128xf32>
      tpu.vector_store %arg12[%c0_30, %c0_31], %68 {strides = array<i32>} : memref<8x128xf32, #tpu.memory_space<vmem>>, vector<8x128xf32>,
      %c0_32 = arith.constant 0 : index
      %c0_33 = arith.constant 0 : index
      %70 = vector.load %arg3[%c0_32, %c0_33] : memref<8x128xf32, #tpu.memory_space<vmem>>, vector<8x128xf32>
      %71 = arith.truncf %70 : vector<8x128xf32> to vector<8x128xbf16>
      %c0_34 = arith.constant 0 : index
      %c0_35 = arith.constant 0 : index
      %72 = vector.load %arg5[%c0_34, %c0_35] : memref<128x384xbf16, #tpu.memory_space<vmem>>, vector<128x384xbf16>
      %cst_36 = arith.constant dense<0.000000e+00> : vector<8x384xf32>
      %73 = tpu.matmul %71, %72, %cst_36 {dimension_numbers = #tpu.dot_dimension_numbers<[1], [0], [0], [1], [0, 0, 1, 1], [], []>} : vector<8x128xbf16>, vector<128x384xbf16>, vector<8x384xf32> -> vector<8x384xf32>
      %c0_37 = arith.constant 0 : index
      %c0_38 = arith.constant 0 : index
      %74 = vector.load %arg6[%c0_37, %c0_38] : memref<1x384xf32, #tpu.memory_space<vmem>>, vector<1x384xf32>
      %75 = vector.broadcast %74 : vector<1x384xf32> to vector<8x384xf32>
      %76 = arith.addf %73, %75 : vector<8x384xf32>
      %c0_39 = arith.constant 0 : index
      %c0_40 = arith.constant 0 : index
      %77 = vector.load %arg13[%c0_39, %c0_40] : memref<8x384xf32, #tpu.memory_space<vmem>>, vector<8x384xf32>
      tpu.vector_store %arg13[%c0_39, %c0_40], %76 {strides = array<i32>} : memref<8x384xf32, #tpu.memory_space<vmem>>, vector<8x384xf32>,
    } else {
    }
    %c0 = arith.constant 0 : index
    %c0_1 = arith.constant 0 : index
    %c0_2 = arith.constant 0 : index
    %3 = vector.load %arg2[%c0, %c0_1, %c0_2] : memref<1x8x128xf32, #tpu.memory_space<vmem>>, vector<1x8x128xf32>
    %4 = vector.shape_cast %3 : vector<1x8x128xf32> to vector<8x128xf32>
    %5 = arith.truncf %4 : vector<8x128xf32> to vector<8x128xbf16>
    %c0_3 = arith.constant 0 : index
    %c0_4 = arith.constant 0 : index
    %6 = vector.load %arg12[%c0_3, %c0_4] : memref<8x128xf32, #tpu.memory_space<vmem>>, vector<8x128xf32>
    %c0_5 = arith.constant 0 : index
    %c0_6 = arith.constant 0 : index
    %7 = vector.load %arg4[%c0_5, %c0_6] : memref<128x384xbf16, #tpu.memory_space<vmem>>, vector<128x384xbf16>
    %cst = arith.constant dense<0.000000e+00> : vector<8x384xf32>
    %8 = tpu.matmul %5, %7, %cst {dimension_numbers = #tpu.dot_dimension_numbers<[1], [0], [0], [1], [0, 0, 1, 1], [], []>} : vector<8x128xbf16>, vector<128x384xbf16>, vector<8x384xf32> -> vector<8x384xf32>
    %c0_7 = arith.constant 0 : index
    %c0_8 = arith.constant 0 : index
    %9 = vector.load %arg13[%c0_7, %c0_8] : memref<8x384xf32, #tpu.memory_space<vmem>>, vector<8x384xf32>
    %10 = arith.addf %8, %9 : vector<8x384xf32>
    %11 = arith.truncf %6 : vector<8x128xf32> to vector<8x128xbf16>
    %c0_9 = arith.constant 0 : index
    %c0_10 = arith.constant 0 : index
    %12 = vector.load %arg7[%c0_9, %c0_10] : memref<128x384xbf16, #tpu.memory_space<vmem>>, vector<128x384xbf16>
    %cst_11 = arith.constant dense<0.000000e+00> : vector<8x384xf32>
    %13 = tpu.matmul %11, %12, %cst_11 {dimension_numbers = #tpu.dot_dimension_numbers<[1], [0], [0], [1], [0, 0, 1, 1], [], []>} : vector<8x128xbf16>, vector<128x384xbf16>, vector<8x384xf32> -> vector<8x384xf32>
    %c0_12 = arith.constant 0 : index
    %c0_13 = arith.constant 0 : index
    %14 = vector.load %arg8[%c0_12, %c0_13] : memref<1x384xf32, #tpu.memory_space<vmem>>, vector<1x384xf32>
    %15 = vector.broadcast %14 : vector<1x384xf32> to vector<8x384xf32>
    %16 = arith.addf %13, %15 : vector<8x384xf32>
    %17 = vector.extract_strided_slice %10 {offsets = [0, 0], sizes = [8, 128], strides = [1, 1]} : vector<8x384xf32> to vector<8x128xf32>
    %18 = vector.extract_strided_slice %16 {offsets = [0, 0], sizes = [8, 128], strides = [1, 1]} : vector<8x384xf32> to vector<8x128xf32>
    %19 = arith.addf %17, %18 : vector<8x128xf32>
    %20 = arith.negf %19 : vector<8x128xf32>
    %21 = math.exp %20 : vector<8x128xf32>
    %cst_14 = arith.constant 1.000000e+00 : f32
    %22 = vector.broadcast %cst_14 : f32 to vector<8x128xf32>
    %23 = arith.addf %22, %21 : vector<8x128xf32>
    %24 = arith.divf %22, %23 : vector<8x128xf32>
    %25 = vector.extract_strided_slice %10 {offsets = [0, 128], sizes = [8, 128], strides = [1, 1]} : vector<8x384xf32> to vector<8x128xf32>
    %26 = vector.extract_strided_slice %16 {offsets = [0, 128], sizes = [8, 128], strides = [1, 1]} : vector<8x384xf32> to vector<8x128xf32>
    %27 = arith.addf %25, %26 : vector<8x128xf32>
    %28 = arith.negf %27 : vector<8x128xf32>
    %29 = math.exp %28 : vector<8x128xf32>
    %cst_15 = arith.constant 1.000000e+00 : f32
    %30 = vector.broadcast %cst_15 : f32 to vector<8x128xf32>
    %31 = arith.addf %30, %29 : vector<8x128xf32>
    %32 = arith.divf %30, %31 : vector<8x128xf32>
    %33 = vector.extract_strided_slice %10 {offsets = [0, 256], sizes = [8, 128], strides = [1, 1]} : vector<8x384xf32> to vector<8x128xf32>
    %34 = vector.extract_strided_slice %16 {offsets = [0, 256], sizes = [8, 128], strides = [1, 1]} : vector<8x384xf32> to vector<8x128xf32>
    %35 = arith.mulf %24, %34 : vector<8x128xf32>
    %36 = arith.addf %33, %35 : vector<8x128xf32>
    %37 = math.tanh %36 : vector<8x128xf32>
    %cst_16 = arith.constant 1.000000e+00 : f32
    %38 = vector.broadcast %cst_16 : f32 to vector<8x128xf32>
    %39 = arith.subf %38, %32 : vector<8x128xf32>
    %40 = arith.mulf %39, %37 : vector<8x128xf32>
    %41 = arith.mulf %32, %6 : vector<8x128xf32>
    %42 = arith.addf %40, %41 : vector<8x128xf32>
    %c0_17 = arith.constant 0 : index
    %c0_18 = arith.constant 0 : index
    %43 = vector.load %arg12[%c0_17, %c0_18] : memref<8x128xf32, #tpu.memory_space<vmem>>, vector<8x128xf32>
    tpu.vector_store %arg12[%c0_17, %c0_18], %42 {strides = array<i32>} : memref<8x128xf32, #tpu.memory_space<vmem>>, vector<8x128xf32>,
    %44 = arith.truncf %42 : vector<8x128xf32> to vector<8x128xbf16>
    %c0_19 = arith.constant 0 : index
    %c0_20 = arith.constant 0 : index
    %45 = vector.load %arg9[%c0_19, %c0_20] : memref<128x512xbf16, #tpu.memory_space<vmem>>, vector<128x512xbf16>
    %cst_21 = arith.constant dense<0.000000e+00> : vector<8x512xf32>
    %46 = tpu.matmul %44, %45, %cst_21 {dimension_numbers = #tpu.dot_dimension_numbers<[1], [0], [0], [1], [0, 0, 1, 1], [], []>} : vector<8x128xbf16>, vector<128x512xbf16>, vector<8x512xf32> -> vector<8x512xf32>
    %c0_22 = arith.constant 0 : index
    %c0_23 = arith.constant 0 : index
    %47 = vector.load %arg10[%c0_22, %c0_23] : memref<1x512xf32, #tpu.memory_space<vmem>>, vector<1x512xf32>
    %48 = vector.broadcast %47 : vector<1x512xf32> to vector<8x512xf32>
    %49 = arith.addf %46, %48 : vector<8x512xf32>
    %cst_24 = arith.constant dense<0xFF800000> : vector<8xf32>
    %50 = vector.multi_reduction <maximumf>, %49, %cst_24 [1] : vector<8x512xf32> to vector<8xf32>
    %51 = vector.shape_cast %50 : vector<8xf32> to vector<8x1xf32>
    %52 = vector.broadcast %51 : vector<8x1xf32> to vector<8x512xf32>
    %53 = arith.subf %49, %52 : vector<8x512xf32>
    %54 = math.exp %53 : vector<8x512xf32>
    %cst_25 = arith.constant dense<0.000000e+00> : vector<8xf32>
    %55 = vector.multi_reduction <add>, %54, %cst_25 [1] : vector<8x512xf32> to vector<8xf32>
    %56 = vector.shape_cast %55 : vector<8xf32> to vector<8x1xf32>
    %57 = math.log %56 : vector<8x1xf32>
    %58 = arith.addf %51, %57 : vector<8x1xf32>
    %59 = vector.broadcast %58 : vector<8x1xf32> to vector<8x512xf32>
    %60 = arith.subf %49, %59 : vector<8x512xf32>
    %c0_26 = arith.constant 0 : index
    %61 = arith.index_cast %arg1 : i32 to index
    %c0_27 = arith.constant 0 : index
    %62 = vector.load %arg14[%c0_26, %61, %c0_27] : memref<8x8x512xf32, #tpu.memory_space<vmem>>, vector<8x1x512xf32>
    %63 = vector.shape_cast %62 : vector<8x1x512xf32> to vector<8x512xf32>
    %64 = vector.shape_cast %60 : vector<8x512xf32> to vector<8x1x512xf32>
    tpu.vector_store %arg14[%c0_26, %61, %c0_27], %64 {strides = array<i32>} : memref<8x8x512xf32, #tpu.memory_space<vmem>>, vector<8x1x512xf32>,
    %c7_i32 = arith.constant 7 : i32
    %65 = arith.cmpi eq, %arg1, %c7_i32 : i32
    %66 = arith.extui %65 : i1 to i32
    %c0_i32_28 = arith.constant 0 : i32
    %67 = arith.cmpi ne, %66, %c0_i32_28 : i32
    scf.if %67 {
      %c0_29 = arith.constant 0 : index
      %c0_30 = arith.constant 0 : index
      %c0_31 = arith.constant 0 : index
      %68 = vector.load %arg14[%c0_29, %c0_30, %c0_31] : memref<8x8x512xf32, #tpu.memory_space<vmem>>, vector<8x8x512xf32>
      %69 = arith.truncf %68 : vector<8x8x512xf32> to vector<8x8x512xbf16>
      %c0_32 = arith.constant 0 : index
      %c0_33 = arith.constant 0 : index
      %c0_34 = arith.constant 0 : index
      %70 = vector.load %arg11[%c0_32, %c0_33, %c0_34] : memref<8x8x512xbf16, #tpu.memory_space<vmem>>, vector<8x8x512xbf16>
      tpu.vector_store %arg11[%c0_32, %c0_33, %c0_34], %69 {strides = array<i32>} : memref<8x8x512xbf16, #tpu.memory_space<vmem>>, vector<8x8x512xbf16>,
    } else {
    }
    return
  }
  func.func @transform_0(%arg0: i32, %arg1: i32) -> (i32, i32, i32) {
    %c0_i32 = arith.constant 0 : i32
    %c0_i32_0 = arith.constant 0 : i32
    return %arg1, %arg0, %c0_i32 : i32, i32, i32
  }
  func.func @transform_1(%arg0: i32, %arg1: i32) -> (i32, i32) {
    %c0_i32 = arith.constant 0 : i32
    %c0_i32_0 = arith.constant 0 : i32
    return %arg0, %c0_i32 : i32, i32
  }
  func.func @transform_2(%arg0: i32, %arg1: i32) -> (i32, i32) {
    %c0_i32 = arith.constant 0 : i32
    %c0_i32_0 = arith.constant 0 : i32
    %c0_i32_1 = arith.constant 0 : i32
    return %c0_i32, %c0_i32_0 : i32, i32
  }
  func.func @transform_3(%arg0: i32, %arg1: i32) -> (i32, i32) {
    %c0_i32 = arith.constant 0 : i32
    %c0_i32_0 = arith.constant 0 : i32
    %c0_i32_1 = arith.constant 0 : i32
    return %c0_i32, %c0_i32_0 : i32, i32
  }
  func.func @transform_4(%arg0: i32, %arg1: i32) -> (i32, i32) {
    %c0_i32 = arith.constant 0 : i32
    %c0_i32_0 = arith.constant 0 : i32
    %c0_i32_1 = arith.constant 0 : i32
    return %c0_i32, %c0_i32_0 : i32, i32
  }
  func.func @transform_5(%arg0: i32, %arg1: i32) -> (i32, i32) {
    %c0_i32 = arith.constant 0 : i32
    %c0_i32_0 = arith.constant 0 : i32
    %c0_i32_1 = arith.constant 0 : i32
    return %c0_i32, %c0_i32_0 : i32, i32
  }
  func.func @transform_6(%arg0: i32, %arg1: i32) -> (i32, i32) {
    %c0_i32 = arith.constant 0 : i32
    %c0_i32_0 = arith.constant 0 : i32
    %c0_i32_1 = arith.constant 0 : i32
    return %c0_i32, %c0_i32_0 : i32, i32
  }
  func.func @transform_7(%arg0: i32, %arg1: i32) -> (i32, i32) {
    %c0_i32 = arith.constant 0 : i32
    %c0_i32_0 = arith.constant 0 : i32
    %c0_i32_1 = arith.constant 0 : i32
    return %c0_i32, %c0_i32_0 : i32, i32
  }
  func.func @transform_8(%arg0: i32, %arg1: i32) -> (i32, i32) {
    %c0_i32 = arith.constant 0 : i32
    %c0_i32_0 = arith.constant 0 : i32
    %c0_i32_1 = arith.constant 0 : i32
    return %c0_i32, %c0_i32_0 : i32, i32
  }
  func.func @transform_9(%arg0: i32, %arg1: i32) -> (i32, i32, i32) {
    %c0_i32 = arith.constant 0 : i32
    %c0_i32_0 = arith.constant 0 : i32
    %c0_i32_1 = arith.constant 0 : i32
    return %arg0, %c0_i32, %c0_i32_0 : i32, i32, i32
  }
}

</mosaic_0001>

<bundles_post_ra>
// kernel: stal_forward.2
= control target key start
LH: loop header
LB: loop body
LE: loop exit
PB: predicated region body
PF: predicated region fallthrough
CT: control target
= control target key end

     0   :  { %v536_v0 = vmov 0   ;;  %v231_v36 = vlaneseq  ;;  %v537_v41 = vmov 0.0   ;;  %vm412_vm1 = vcmask 1041409   ;;  %s670_s0 = inlined_call_operand.vmem [shape: s32[8,1], index: 0, kind: input, shape index: {}]   ;;  %s671_s2 = inlined_call_operand.vmem [shape: bf16[128,128], index: 2, kind: input, shape index: {}]   ;;  %s672_s1 = inlined_call_operand.vmem [shape: f32[8,16,128], index: 1, kind: input, shape index: {}]   ;;  %s673_s3 = inlined_call_operand.vmem [shape: f32[1,128], index: 3, kind: input, shape index: {}]   ;;  %s674_s4 = inlined_call_operand.vmem [shape: f32[8,128], index: 4, kind: output, shape index: {}]  }
   0x1   :  { %524 = vset.pattern.permute.xlu0 %v536_v0  ;;  %v236_v1 = vld [vmem:[%s670_s0] sm:$0xff]  ;;  %525 = vset.pattern.permute.xlu1 %v536_v0  ;;  %v527_v4 = vld [vmem:[%s671_s2 + $0x8] sm:$0xff]   ;;  %v528_v6 = vld [vmem:[%s671_s2 + $0x10] sm:$0xff]   ;;  %vm414_vm2 = vcmask 1042434   ;;  %vm416_vm3 = vcmask 1043459   ;;  %vm418_vm4 = vcmask 1044484  }
   0x2   :  { %238 = vperm.xlu0 %524, %v236_v1   ;;  %v526_v2 = vld [vmem:[%s671_s2] sm:$0xff]   ;;  %v433_v3 = vcvt.s32.f32 %v236_v1  ;;  %v24_v8 = vld [vmem:[%s672_s1 + $0x8] sm:$0xff]  ;;  %v529_v9 = vld [vmem:[%s671_s2 + $0x18] sm:$0xff]   ;;  %v245_v37 = vshrl.u32 %v231_v36, 7  ;;  %v232_v38 = vand.u32 127, %v231_v36  ;;  %vm420_vm5 = vcmask 1045509  }
   0x3   :  { %474 = vmatprep.subr.bf16.mxu0 %v526_v2  ;;  %506 = vmatprep.subr.bf16.mxu1 %v526_v2  ;;  %v23_v7 = vld [vmem:[%s672_s1] sm:$0xff]  ;;  %v32_v12 = vld [vmem:[%s672_s1 + $0x48] sm:$0xff]  ;;  %v532_v16 = vld [vmem:[%s671_s2 + $0x30] sm:$0xff]   ;;  %vm422_vm6 = vcmask 1046534   ;;  %vm424_vm7 = vcmask 1047559  }
   0x4   :  { %v434_v5 = vmax.f32 %v433_v3, 1.0  ;;  %475 = vmatpush3.bf16.msra.mxu0 %v526_v2  ;;  %514 = vmatpush3.bf16.msra.mxu1 %v526_v2  ;;  %v39_v10 = vpack.c.bf16 %v24_v8, %v23_v7  ;;  %v31_v11 = vld [vmem:[%s672_s1 + $0x40] sm:$0xff]  ;;  %v531_v15 = vld [vmem:[%s671_s2 + $0x28] sm:$0xff]   ;;  %v533_v17 = vld [vmem:[%s671_s2 + $0x38] sm:$0xff]   ;;  %v246_v39 = vsub.s32 0, %v245_v37  ;;  %v257_v44 = vsub.s32 1, %v245_v37 }
   0x5   :  { %476 = vmatprep.subr.bf16.mxu0 %v527_v4  ;;  %507 = vmatprep.subr.bf16.mxu1 %v527_v4  ;;  %v43_v13 = vpack.c.bf16 %v32_v12, %v31_v11  ;;  %v530_v14 = vld [vmem:[%s671_s2 + $0x20] sm:$0xff]   ;;  %v25_v18 = vld [vmem:[%s672_s1 + $0x10] sm:$0xff]  ;;  %v26_v19 = vld [vmem:[%s672_s1 + $0x18] sm:$0xff]  ;;  %v268_v46 = vsub.s32 2, %v245_v37  ;;  %v279_v48 = vsub.s32 3, %v245_v37  ;;  %v290_v50 = vsub.s32 4, %v245_v37 }
   0x6   :  { %438 = vperm.xlu1 %525, %v434_v5   ;;  %490 = vmatprep.mubr.bf16.mxu0 %v39_v10  ;;  %v27_v20 = vld [vmem:[%s672_s1 + $0x20] sm:$0xff]  ;;  %v33_v21 = vld [vmem:[%s672_s1 + $0x50] sm:$0xff]  ;;  %v34_v22 = vld [vmem:[%s672_s1 + $0x58] sm:$0xff]  ;;  %v40_v26 = vpack.c.bf16 %v26_v19, %v25_v18  ;;  %v301_v52 = vsub.s32 5, %v245_v37  ;;  %v312_v54 = vsub.s32 6, %v245_v37  ;;  %v323_v56 = vsub.s32 7, %v245_v37 }
   0x7   :  { %498 = vmatprep.mubr.bf16.mxu1 %v43_v13  ;;  %v28_v23 = vld [vmem:[%s672_s1 + $0x28] sm:$0xff]  ;;  %v35_v24 = vld [vmem:[%s672_s1 + $0x60] sm:$0xff]  ;;  %v44_v27 = vpack.c.bf16 %v34_v22, %v33_v21  ;;  %v29_v30 = vld [vmem:[%s672_s1 + $0x30] sm:$0xff] }
   0x8   :  { %477 = vmatpush3.bf16.msra.mxu0 %v527_v4  ;;  %515 = vmatpush3.bf16.msra.mxu1 %v527_v4  ;;  %v36_v25 = vld [vmem:[%s672_s1 + $0x68] sm:$0xff]  ;;  %v41_v28 = vpack.c.bf16 %v28_v23, %v27_v20  ;;  %v30_v31 = vld [vmem:[%s672_s1 + $0x38] sm:$0xff]  ;;  %v37_v32 = vld [vmem:[%s672_s1 + $0x70] sm:$0xff] }
   0x9   :  { %478 = vmatprep.subr.bf16.mxu0 %v528_v6  ;;  %508 = vmatprep.subr.bf16.mxu1 %v528_v6  ;;  %v45_v29 = vpack.c.bf16 %v36_v25, %v35_v24  ;;  %v38_v33 = vld [vmem:[%s672_s1 + $0x78] sm:$0xff]  ;;  %v42_v34 = vpack.c.bf16 %v30_v31, %v29_v30  ;;  %v643_v59 = vld [vmem:[%s673_s3] ss:$0 sm:$0xff] }
   0xa   :  { %v46_v35 = vpack.c.bf16 %v38_v33, %v37_v32 }
   0xc   :  { %479 = vmatpush3.bf16.msra.mxu0 %v528_v6  ;;  %516 = vmatpush3.bf16.msra.mxu1 %v528_v6 }
   0xd   :  { %480 = vmatprep.subr.bf16.mxu0 %v529_v9  ;;  %509 = vmatprep.subr.bf16.mxu1 %v529_v9 }
  0x10   :  { %481 = vmatpush3.bf16.msra.mxu0 %v529_v9  ;;  %517 = vmatpush3.bf16.msra.mxu1 %v529_v9 }
  0x11   :  { %482 = vmatprep.subr.bf16.mxu0 %v530_v14  ;;  %510 = vmatprep.subr.bf16.mxu1 %v530_v14 }
  0x14   :  { %483 = vmatpush3.bf16.msra.mxu0 %v530_v14  ;;  %518 = vmatpush3.bf16.msra.mxu1 %v530_v14 }
  0x15   :  { %484 = vmatprep.subr.bf16.mxu0 %v531_v15  ;;  %511 = vmatprep.subr.bf16.mxu1 %v531_v15 }
  0x18   :  { %485 = vmatpush3.bf16.msra.mxu0 %v531_v15  ;;  %519 = vmatpush3.bf16.msra.mxu1 %v531_v15 }
  0x19   :  { %486 = vmatprep.subr.bf16.mxu0 %v532_v16  ;;  %512 = vmatprep.subr.bf16.mxu1 %v532_v16 }
  0x1c   :  { %487 = vmatpush3.bf16.msra.mxu0 %v532_v16  ;;  %520 = vmatpush3.bf16.msra.mxu1 %v532_v16 }
  0x1d   :  { %488 = vmatprep.subr.bf16.mxu0 %v533_v17  ;;  %513 = vmatprep.subr.bf16.mxu1 %v533_v17 }
  0x20   :  { %489 = vmatpush3.bf16.msra.mxu0 %v533_v17  ;;  %521 = vmatpush3.bf16.msra.mxu1 %v533_v17 }
  0x23   :  { %491 = vmatmul.mubr.bf16.vlgmr.msra.gmra.mrb[0].mxu0 %v40_v26  ;;  %499 = vmatmul.mubr.bf16.vlgmr.msra.gmra.mrb[0].mxu1 %v44_v27 }
  0x24   :  { %494 = vmatprep.mubr.bf16.mxu0 %v41_v28  ;;  %502 = vmatprep.mubr.bf16.mxu1 %v45_v29 }
  0x2b   :  { %495 = vmatmul.mubr.bf16.gmra.mrb[4].mxu0 %v42_v34  ;;  %503 = vmatmul.mubr.bf16.gmra.mrb[4].mxu1 %v46_v35 }
  0x81   :  { %v239_v40 = vpop.permute.xlu0 %238 }
  0x82   :  { %vm240_vm0 = vcmp.lt.s32.totalorder %v232_v38, %v239_v40 }
  0x83   :  { %v457_v42 = vsel %vm240_vm0, 1.0, %v537_v41 }
  0x84   :  { %v247_v43 = vrot.slane %v457_v42, %v246_v39  ;;  %v258_v45 = vrot.slane %v457_v42, %v257_v44  ;;  %v269_v47 = vrot.slane %v457_v42, %v268_v46  ;;  %v280_v49 = vrot.slane %v457_v42, %v279_v48 }
  0x85   :  { %v291_v51 = vrot.slane %v457_v42, %v290_v50  ;;  %v302_v53 = vrot.slane %v457_v42, %v301_v52  ;;  %v313_v55 = vrot.slane %v457_v42, %v312_v54  ;;  %v324_v57 = vrot.slane %v457_v42, %v323_v56  ;;  %v638_v58 = vpop.permute.xlu1 %438 }
  0x86   :  { %253 = vbcast.lane.b32.xlu1 %v247_v43, 264  ;;  %249 = vbcast.lane.b32.xlu0 %v247_v43, 256  ;;  %534 = vrcp.f32 %v638_v58 }
  0x8a   :  { %260 = vbcast.lane.b32.xlu1 %v258_v45, 256  ;;  %264 = vbcast.lane.b32.xlu0 %v258_v45, 264 }
  0x8e   :  { %271 = vbcast.lane.b32.xlu1 %v269_v47, 256  ;;  %275 = vbcast.lane.b32.xlu0 %v269_v47, 264 }
  0x92   :  { %282 = vbcast.lane.b32.xlu1 %v280_v49, 256  ;;  %286 = vbcast.lane.b32.xlu0 %v280_v49, 264 }
  0x96   :  { %293 = vbcast.lane.b32.xlu1 %v291_v51, 256  ;;  %297 = vbcast.lane.b32.xlu0 %v291_v51, 264 }
  0x9a   :  { %304 = vbcast.lane.b32.xlu1 %v302_v53, 256  ;;  %308 = vbcast.lane.b32.xlu0 %v302_v53, 264 }
  0x9e   :  { %315 = vbcast.lane.b32.xlu1 %v313_v55, 256  ;;  %319 = vbcast.lane.b32.xlu0 %v313_v55, 264 }
  0xa2   :  { %330 = vbcast.lane.b32.xlu1 %v324_v57, 264  ;;  %326 = vbcast.lane.b32.xlu0 %v324_v57, 256 }
  0xf6   :  { %v492_v60 = vpop.f32.mrb[0].mxu0  ;;  %v500_v61 = vpop.f32.mrb[0].mxu1 }
  0xf7   :  { %v161_v62 = vadd.f32 %v492_v60, %v643_v59  ;;  %v152_v63 = vpop.f32.mrb[1].mxu0  ;;  %v184_v7 = vpop.f32.mrb[1].mxu1  ;;  %v193_v55 = vadd.f32 %v500_v61, %v643_v59 }
  0xf8   :  { %v254_v0 = vpop.permute.xlu1 %253  ;;  %v153_v1 = vadd.f32 %v643_v59, %v152_v63  ;;  %v250_v2 = vpop.permute.xlu0 %249  ;;  %v185_v30 = vadd.f32 %v643_v59, %v184_v7 }
  0xf9   :  { %v493_v3 = vpop.f32.mrb[2].mxu0  ;;  %v217_v4 = vmax.f32 %v161_v62, 0.0  ;;  %v501_v10 = vpop.f32.mrb[2].mxu1  ;;  %v225_v61 = vmax.f32 %v193_v55, 0.0 }
  0xfa   :  { %v164_v5 = vadd.f32 %v493_v3, %v643_v59  ;;  %v155_v6 = vpop.f32.mrb[3].mxu0  ;;  %v215_v8 = vmax.f32 %v153_v1, 0.0  ;;  %v187_v13 = vpop.f32.mrb[3].mxu1  ;;  %v223_v47 = vmax.f32 %v185_v30, 0.0  ;;  %v196_v60 = vadd.f32 %v501_v10, %v643_v59 }
  0xfb   :  { %v156_v9 = vadd.f32 %v643_v59, %v155_v6  ;;  %v188_v35 = vadd.f32 %v643_v59, %v187_v13 }
  0xfc   :  { %v218_v11 = vmax.f32 %v164_v5, 0.0  ;;  %v261_v12 = vpop.permute.xlu1 %260  ;;  %v265_v16 = vpop.permute.xlu0 %264  ;;  %v332_v18 = vmul.f32 %v250_v2, %v215_v8  ;;  %v226_v13 = vmax.f32 %v196_v60, 0.0 }
  0xfd   :  { %v216_v14 = vmax.f32 %v156_v9, 0.0  ;;  %v334_v15 = vmul.f32 %v261_v12, %v217_v4  ;;  %v224_v51 = vmax.f32 %v188_v35, 0.0 }
  0xfe   :  { %v335_v17 = vmul.f32 %v265_v16, %v218_v11  ;;  %v496_v20 = vpop.f32.mrb[4].mxu0  ;;  %v649_v21 = vpop.f32.mrb[4].mxu1 }
  0xff   :  { %v333_v19 = vmul.f32 %v254_v0, %v216_v14  ;;  %v177_v23 = vadd.f32 %v496_v20, %v643_v59  ;;  %v168_v24 = vpop.f32.mrb[5].mxu0  ;;  %v200_v36 = vpop.f32.mrb[5].mxu1 }
 0x100   :  { %v355_v22 = vadd.f32 %v335_v17, %v334_v15  ;;  %v272_v25 = vpop.permute.xlu1 %271  ;;  %v169_v27 = vadd.f32 %v643_v59, %v168_v24  ;;  %v276_v28 = vpop.permute.xlu0 %275  ;;  %v201_v4 = vadd.f32 %v643_v59, %v200_v36 }
 0x101   :  { %v348_v26 = vadd.f32 %v333_v19, %v332_v18  ;;  %v497_v29 = vpop.f32.mrb[6].mxu0  ;;  %v221_v32 = vmax.f32 %v177_v23, 0.0  ;;  %v505_v40 = vpop.f32.mrb[6].mxu1 }
 0x102   :  { %v356_v31 = vrot.slane %v355_v22, 4  ;;  %v180_v33 = vadd.f32 %v497_v29, %v643_v59  ;;  %v171_v34 = vpop.f32.mrb[7].mxu0  ;;  %v219_v38 = vmax.f32 %v169_v27, 0.0  ;;  %v203_v44 = vpop.f32.mrb[7].mxu1  ;;  %v227_v18 = vmax.f32 %v201_v4, 0.0 }
 0x103   :  { %v349_v37 = vrot.slane %v348_v26, 4  ;;  %v172_v39 = vadd.f32 %v643_v59, %v171_v34  ;;  %v204_v8 = vadd.f32 %v643_v59, %v203_v44 }
 0x104   :  { %v357_v41 = vadd.f32 %v356_v31, %v355_v22  ;;  %v222_v42 = vmax.f32 %v180_v33, 0.0  ;;  %v283_v43 = vpop.permute.xlu1 %282  ;;  %v287_v49 = vpop.permute.xlu0 %286  ;;  %v336_v54 = vmul.f32 %v272_v25, %v219_v38  ;;  %v209_v31 = vadd.f32 %v649_v21, %v643_v59 }
 0x105   :  { %v350_v45 = vadd.f32 %v349_v37, %v348_v26  ;;  %v220_v46 = vmax.f32 %v172_v39, 0.0  ;;  %v338_v48 = vmul.f32 %v283_v43, %v221_v32  ;;  %v228_v24 = vmax.f32 %v204_v8, 0.0 }
 0x106   :  { %v358_v50 = vrot.slane %v357_v41, 2  ;;  %v339_v52 = vmul.f32 %v287_v49, %v222_v42 }
 0x107   :  { %v351_v53 = vrot.slane %v350_v45, 2  ;;  %v337_v56 = vmul.f32 %v276_v28, %v220_v46  ;;  %v212_v28 = vadd.f32 %v505_v40, %v643_v59 }
 0x108   :  { %v359_v57 = vadd.f32 %v358_v50, %v357_v41  ;;  %v369_v62 = vadd.f32 %v339_v52, %v338_v48  ;;  %v294_v63 = vpop.permute.xlu1 %293  ;;  %v298_v3 = vpop.permute.xlu0 %297 }
 0x109   :  { %v352_v0 = vadd.f32 %v351_v53, %v350_v45  ;;  %v362_v1 = vadd.f32 %v337_v56, %v336_v54  ;;  %v340_v2 = vmul.f32 %v294_v63, %v223_v47  ;;  %v341_v7 = vmul.f32 %v298_v3, %v224_v51 }
 0x10a   :  { %v360_v5 = vrot.slane %v359_v57, 1  ;;  %v370_v6 = vrot.slane %v369_v62, 4  ;;  %v230_v43 = vmax.f32 %v212_v28, 0.0  ;;  %v229_v45 = vmax.f32 %v209_v31, 0.0 }
 0x10b   :  { %v353_v9 = vrot.slane %v352_v0, 1  ;;  %v363_v11 = vrot.slane %v362_v1, 4  ;;  %v376_v14 = vadd.f32 %v341_v7, %v340_v2 }
 0x10c   :  { %v361_v12 = vadd.f32 %v360_v5, %v359_v57  ;;  %v371_v10 = vadd.f32 %v370_v6, %v369_v62  ;;  %v305_v15 = vpop.permute.xlu1 %304  ;;  %v309_v20 = vpop.permute.xlu0 %308 }
 0x10d   :  { %v354_v16 = vadd.f32 %v353_v9, %v352_v0  ;;  %v364_v17 = vadd.f32 %v363_v11, %v362_v1  ;;  %v342_v19 = vmul.f32 %v305_v15, %v225_v61  ;;  %v377_v23 = vrot.slane %v376_v14, 4 }
 0x10e   :  { %v372_v22 = vrot.slane %v371_v10, 2  ;;  %v343_v25 = vmul.f32 %v309_v20, %v226_v13 }
 0x10f   :  { %v413_v26 = vsel %vm412_vm1, %v361_v12, %v354_v16  ;;  %v365_v27 = vrot.slane %v364_v17, 2  ;;  %v378_v30 = vadd.f32 %v377_v23, %v376_v14 }
 0x110   :  { %v373_v29 = vadd.f32 %v372_v22, %v371_v10  ;;  %v383_v32 = vadd.f32 %v343_v25, %v342_v19  ;;  %v316_v33 = vpop.permute.xlu1 %315  ;;  %v320_v36 = vpop.permute.xlu0 %319 }
 0x111   :  { %v366_v34 = vadd.f32 %v365_v27, %v364_v17  ;;  %v344_v35 = vmul.f32 %v316_v33, %v227_v18  ;;  %v379_v38 = vrot.slane %v378_v30, 2  ;;  %v345_v41 = vmul.f32 %v320_v36, %v228_v24  ;;  %v535_v10 = vpop.eup %534 }
 0x112   :  { %v374_v37 = vrot.slane %v373_v29, 1  ;;  %v384_v39 = vrot.slane %v383_v32, 4 }
 0x113   :  { %v367_v42 = vrot.slane %v366_v34, 1  ;;  %v380_v44 = vadd.f32 %v379_v38, %v378_v30  ;;  %v390_v46 = vadd.f32 %v345_v41, %v344_v35 }
 0x114   :  { %v385_v40 = vadd.f32 %v384_v39, %v383_v32  ;;  %v331_v47 = vpop.permute.xlu1 %330  ;;  %v375_v59 = vadd.f32 %v374_v37, %v373_v29  ;;  %v327_v49 = vpop.permute.xlu0 %326 }
 0x115   :  { %v368_v48 = vadd.f32 %v367_v42, %v366_v34  ;;  %v347_v21 = vmul.f32 %v331_v47, %v230_v43  ;;  %v381_v50 = vrot.slane %v380_v44, 1  ;;  %v391_v52 = vrot.slane %v390_v46, 4 }
 0x116   :  { %v386_v51 = vrot.slane %v385_v40, 2  ;;  %v346_v53 = vmul.f32 %v327_v49, %v229_v45 }
 0x117   :  { %v415_v54 = vsel %vm414_vm2, %v368_v48, %v413_v26  ;;  %v382_v56 = vadd.f32 %v381_v50, %v380_v44  ;;  %v392_v60 = vadd.f32 %v391_v52, %v390_v46 }
 0x118   :  { %v417_v55 = vsel %vm416_vm3, %v375_v59, %v415_v54  ;;  %v387_v57 = vadd.f32 %v386_v51, %v385_v40  ;;  %v397_v62 = vadd.f32 %v347_v21, %v346_v53 }
 0x119   :  { %v419_v63 = vsel %vm418_vm4, %v382_v56, %v417_v55  ;;  %v393_v1 = vrot.slane %v392_v60, 2 }
 0x11a   :  { %v388_v0 = vrot.slane %v387_v57, 1  ;;  %v398_v2 = vrot.slane %v397_v62, 4 }
 0x11b   :  { %v394_v4 = vadd.f32 %v393_v1, %v392_v60 }
 0x11c   :  { %v389_v3 = vadd.f32 %v388_v0, %v387_v57  ;;  %v399_v5 = vadd.f32 %v398_v2, %v397_v62 }
 0x11d   :  { %v395_v7 = vrot.slane %v394_v4, 1 }
 0x11e   :  { %v421_v6 = vsel %vm420_vm5, %v389_v3, %v419_v63  ;;  %v400_v8 = vrot.slane %v399_v5, 2 }
 0x11f   :  { %v396_v9 = vadd.f32 %v395_v7, %v394_v4 }
 0x120   :  { %v401_v61 = vadd.f32 %v400_v8, %v399_v5 }
 0x121   :  { %v423_v11 = vsel %vm422_vm6, %v396_v9, %v421_v6 }
 0x122   :  { %v402_v12 = vrot.slane %v401_v61, 1 }
 0x124   :  { %v403_v13 = vadd.f32 %v402_v12, %v401_v61 }
 0x126   :  { %v425_v14 = vsel %vm424_vm7, %v403_v13, %v423_v11 }
 0x127   :  { %v442_v15 = vmul.f32 %v535_v10, %v425_v14 }
 0x129   :  { %443 = vst [vmem:[%s674_s4] sm:$0xff] %v442_v15 }

// kernel: stal_forward.3
= control target key start
LH: loop header
LB: loop body
LE: loop exit
PB: predicated region body
PF: predicated region fallthrough
CT: control target
= control target key end

     0   :  { %14 = vsyncpa [#allocation6], 0  ;;  %s2479_s30 = smov 0   ;;  %s2481_s10 = smov 0   ;;  %s2931_s0 = inlined_call_operand.vmem [shape: f32[8,8,128], index: 0, kind: input, shape index: {}]   ;;  %s2932_s1 = inlined_call_operand.vmem [shape: f32[8,128], index: 1, kind: input, shape index: {}]   ;;  %s2933_s2 = inlined_call_operand.vmem [shape: bf16[128,384], index: 2, kind: input, shape index: {}]   ;;  %s2934_s3 = inlined_call_operand.vmem [shape: bf16[128,384], index: 3, kind: input, shape index: {}]   ;;  %s2935_s4 = inlined_call_operand.vmem [shape: f32[1,384], index: 4, kind: input, shape index: {}]   ;;  %s2936_s5 = inlined_call_operand.vmem [shape: bf16[128,384], index: 5, kind: input, shape index: {}]   ;;  %s2937_s6 = inlined_call_operand.vmem [shape: f32[1,384], index: 6, kind: input, shape index: {}]   ;;  %s2938_s7 = inlined_call_operand.vmem [shape: bf16[128,512], index: 7, kind: input, shape index: {}]   ;;  %s2939_s8 = inlined_call_operand.vmem [shape: f32[1,512], index: 8, kind: input, shape index: {}]   ;;  %s2940_s9 = inlined_call_operand.hbm [shape: bf16[8,8,512], index: 9, kind: output, shape index: {}]  }
   0x1   :  { %s2483_s11 = smov 0  }
   0x2 LB: > { %s1899_s12 = sadd.s32 4294967295, %s2417_s11   ;;  %s29_s13 = sadd.s32 1, %s2413_s10  ;;  %s2417_s11 = sphi %s2483_s11, %s20_s11   ;;  %s2413_s10 = sphi %s2481_s10, %s2945_s10   ;;  %s2409_s30 = sphi %s2479_s30, %s2944_s30  }
   0x3   : > { %p30_p0 = scmp.ge.s32.totalorder %s29_s13, 8  ;;  %p1903_p1 = scmp.ge.s32.totalorder %s2417_s11, 1 }
   0x4   : > { %p313_p2 = scmp.lt.s32.totalorder %s2417_s11, 9 }
   0x5   : > { %s2947_s13 = smov (%p30_p0, %s29_s13), 0 }
   0x6   : > { %p314_p3 = pnand %p1903_p1, %p313_p2 }
   0x7   : > { %p350_p4 = scmp.lt.s32.totalorder (!%p314_p3), %s2409_s30, 7  ;;  %p1905_p5 = scmp.ne.s32.totalorder (!%p314_p3), %s2409_s30, 0 }
   0x8   : > { %317 = sbr.rel (%p314_p3) target bundleno = 1195 (0x4ab), region = 56 }
   0xf   : > { %s351_s14 = scalar_select %p350_p4, %s2409_s30, 7 }
  0x10   : > { %366 = sbr.rel (%p1905_p5) target bundleno = 266 (0x10a), region = 60  ;;  %v2201_v0 = vld [vmem:[%s2934_s3 + $0x4] ss:$12 sps:$4 sm:$0xff] (!%p1905_p5)   ;;  %v2419_v1 = vmov (!%p1905_p5), 0.0   ;;  %v2203_v2 = vld [vmem:[%s2934_s3 + $0x8] ss:$12 sps:$4 sm:$0xff] (!%p1905_p5)   ;;  %v404_v28 = vlaneseq (!%p1905_p5) }
  0x11   : > { %s1904_s15 = sshll.u32 %s351_s14, 3  ;;  %367 = vst [vmem:[#allocation2] sm:$0xff] (!%p1905_p5), %v2419_v1  ;;  %2093 = vmatprep.subr.bf16.mxu1 (!%p1905_p5), %v2419_v1  ;;  %vm2420_vm0 = vmmov (!%p1905_p5), 0   ;;  %547 = vmatprep.subr.bf16.mxu0 (!%p1905_p5), %v2201_v0  ;;  %v2204_v3 = vld [vmem:[%s2934_s3] ss:$12 sps:$4 sm:$0xff] (!%p1905_p5)   ;;  %v2421_v5 = vmov (!%p1905_p5), 0  }
  0x12   : > { %s2505_s18 = scalar_lea.vmem %s2931_s0, %s1904_s15  ;;  %2109 = vmatprep.mubr.msk.bf16.mxu1 (!%p1905_p5), %vm2420_vm0, %v2419_v1  ;;  %2094 = vmatpush3.bf16.msra.mxu1 (!%p1905_p5), %v2203_v2  ;;  %v2205_v4 = vld [vmem:[%s2934_s3 + $0x1c] ss:$12 sps:$4 sm:$0xff] (!%p1905_p5)   ;;  %v2207_v6 = vld [vmem:[%s2934_s3 + $0x20] ss:$12 sps:$4 sm:$0xff] (!%p1905_p5)   ;;  %v2208_v7 = vld [vmem:[%s2934_s3 + $0x18] ss:$12 sps:$4 sm:$0xff] (!%p1905_p5)  }
  0x13   : > { %579 = vmatprep.mubr.bf16.mxu0 (!%p1905_p5), %v2421_v5  ;;  %548 = vmatpush1.bf16.msra.mxu0 (!%p1905_p5), %v2204_v3  ;;  %v2209_v8 = vld [vmem:[%s2934_s3 + $0x34] ss:$12 sps:$4 sm:$0xff] (!%p1905_p5)   ;;  %v2211_v9 = vld [vmem:[%s2934_s3 + $0x38] ss:$12 sps:$4 sm:$0xff] (!%p1905_p5)   ;;  %v2212_v10 = vld [vmem:[%s2934_s3 + $0x30] ss:$12 sps:$4 sm:$0xff] (!%p1905_p5)  }
  0x14   : > { %2095 = vmatprep.subr.bf16.mxu1 (!%p1905_p5), %v2419_v1  ;;  %549 = vmatprep.subr.bf16.mxu0 (!%p1905_p5), %v2205_v4  ;;  %v2213_v11 = vld [vmem:[%s2934_s3 + $0x4c] ss:$12 sps:$4 sm:$0xff] (!%p1905_p5)   ;;  %v2215_v12 = vld [vmem:[%s2934_s3 + $0x50] ss:$12 sps:$4 sm:$0xff] (!%p1905_p5)   ;;  %v2216_v13 = vld [vmem:[%s2934_s3 + $0x48] ss:$12 sps:$4 sm:$0xff] (!%p1905_p5)  }
  0x15   : > { %v2217_v14 = vld [vmem:[%s2934_s3 + $0x64] ss:$12 sps:$4 sm:$0xff] (!%p1905_p5)   ;;  %v2219_v15 = vld [vmem:[%s2934_s3 + $0x68] ss:$12 sps:$4 sm:$0xff] (!%p1905_p5)   ;;  %v2220_v16 = vld [vmem:[%s2934_s3 + $0x60] ss:$12 sps:$4 sm:$0xff] (!%p1905_p5)  }
  0x16   : > { %2096 = vmatpush3.bf16.msra.mxu1 (!%p1905_p5), %v2207_v6  ;;  %v2221_v17 = vld [vmem:[%s2934_s3 + $0x7c] ss:$12 sps:$4 sm:$0xff] (!%p1905_p5)   ;;  %v2223_v18 = vld [vmem:[%s2934_s3 + $0x80] ss:$12 sps:$4 sm:$0xff] (!%p1905_p5)   ;;  %v2224_v19 = vld [vmem:[%s2934_s3 + $0x78] ss:$12 sps:$4 sm:$0xff] (!%p1905_p5)  }
  0x17   : > { %550 = vmatpush1.bf16.msra.mxu0 %v2208_v7  ;;  %2097 = vmatprep.subr.bf16.mxu1 %v2419_v1  ;;  %v2225_v20 = vld [vmem:[%s2934_s3 + $0x94] ss:$12 sps:$4 sm:$0xff]   ;;  %v2227_v21 = vld [vmem:[%s2934_s3 + $0x98] ss:$12 sps:$4 sm:$0xff]   ;;  %v2228_v22 = vld [vmem:[%s2934_s3 + $0x90] ss:$12 sps:$4 sm:$0xff]  }
  0x18   : > { %551 = vmatprep.subr.bf16.mxu0 %v2209_v8  ;;  %v2229_v23 = vld [vmem:[%s2934_s3 + $0xac] ss:$12 sps:$4 sm:$0xff]   ;;  %v2231_v24 = vld [vmem:[%s2934_s3 + $0xb0] ss:$12 sps:$4 sm:$0xff]   ;;  %v368_v25 = vld [vmem:[%s2932_s1] sm:$0xff]  ;;  %v405_v29 = vshrl.u32 %v404_v28, 7 }
  0x19   : > { %v2232_v26 = vld [vmem:[%s2934_s3 + $0xa8] ss:$12 sps:$4 sm:$0xff]   ;;  %v369_v27 = vpack.c.bf16 %v368_v25, %v368_v25  ;;  %v402_v31 = vld [vmem:[%s2935_s4] sm:$0x7] }
  0x1a   : > { %2098 = vmatpush3.bf16.msra.mxu1 %v2211_v9  ;;  %v414_v30 = vsub.s32 2, %v405_v29  ;;  %v406_v32 = vsub.s32 0, %v405_v29  ;;  %v410_v33 = vsub.s32 1, %v405_v29 }
  0x1b   : > { %552 = vmatpush1.bf16.msra.mxu0 %v2212_v10  ;;  %2099 = vmatprep.subr.bf16.mxu1 %v2419_v1 }
  0x1c   : > { %553 = vmatprep.subr.bf16.mxu0 %v2213_v11  ;;  %v415_v34 = vrot.slane %v402_v31, %v414_v30  ;;  %v407_v35 = vrot.slane %v402_v31, %v406_v32  ;;  %v411_v36 = vrot.slane %v402_v31, %v410_v33 }
  0x1e   : > { %2100 = vmatpush3.bf16.msra.mxu1 %v2215_v12 }
  0x1f   : > { %554 = vmatpush1.bf16.msra.mxu0 %v2216_v13  ;;  %2101 = vmatprep.subr.bf16.mxu1 %v2419_v1 }
  0x20   : > { %555 = vmatprep.subr.bf16.mxu0 %v2217_v14 }
  0x22   : > { %2102 = vmatpush3.bf16.msra.mxu1 %v2219_v15 }
  0x23   : > { %556 = vmatpush1.bf16.msra.mxu0 %v2220_v16  ;;  %2103 = vmatprep.subr.bf16.mxu1 %v2419_v1 }
  0x24   : > { %557 = vmatprep.subr.bf16.mxu0 %v2221_v17 }
  0x26   : > { %2104 = vmatpush3.bf16.msra.mxu1 %v2223_v18 }
  0x27   : > { %558 = vmatpush1.bf16.msra.mxu0 %v2224_v19  ;;  %2105 = vmatprep.subr.bf16.mxu1 %v2419_v1 }
  0x28   : > { %559 = vmatprep.subr.bf16.mxu0 %v2225_v20 }
  0x2a   : > { %2106 = vmatpush3.bf16.msra.mxu1 %v2227_v21 }
  0x2b   : > { %560 = vmatpush1.bf16.msra.mxu0 %v2228_v22  ;;  %2107 = vmatprep.subr.bf16.mxu1 %v2419_v1 }
  0x2c   : > { %561 = vmatprep.subr.bf16.mxu0 %v2229_v23 }
  0x2e   : > { %2108 = vmatpush3.bf16.msra.mxu1 %v2231_v24 }
  0x2f   : > { %562 = vmatpush1.bf16.msra.mxu0 %v2232_v26 }
  0x31   : > { %2110 = vmatmul.mubr.bf16.vlgmr.msra.gmra.mrb[0].mxu1 %v369_v27 }
  0x32   : > { %580 = vmatmul.mubr.bf16.vlgmr.msra.gmra.mrb[0].mxu0 %v369_v27 }
 0x104   : > { %v622_v37 = vpop.f32.mrb[0].mxu1 }
 0x105   : > { %v623_v38 = vadd.f32 %v622_v37, %v415_v34  ;;  %v581_v39 = vpop.f32.mrb[0].mxu0  ;;  %v2111_v40 = vpop.f32.mrb[1].mxu1 }
 0x106   : > { %v582_v41 = vadd.f32 %v581_v39, %v407_v35  ;;  %v583_v42 = vpop.f32.mrb[1].mxu0  ;;  %v625_v43 = vpop.f32.mrb[2].mxu1 }
 0x107   : > { %630 = vst [vmem:[#allocation3 + $0x10] sm:$0xff] %v623_v38  ;;  %v584_v44 = vadd.f32 %v583_v42, %v411_v36  ;;  %v585_v45 = vpop.f32.mrb[2].mxu0  ;;  %v2112_v46 = vpop.f32.mrb[3].mxu1 }
 0x108   : > { %628 = vst [vmem:[#allocation3] sm:$0xff] %v582_v41  ;;  %v586_v47 = vpop.f32.mrb[3].mxu0 }
 0x109   : > { %629 = vst [vmem:[#allocation3 + $0x8] sm:$0xff] %v584_v44 }
 0x10a PF: > { %v2233_v48 = vld [vmem:[%s2933_s2 + $0x4] ss:$12 sps:$4 sm:$0xff]   ;;  %v2235_v49 = vld [vmem:[%s2933_s2] ss:$12 sps:$4 sm:$0xff]   ;;  %v2422_v50 = vmov 0.0   ;;  %v2423_v51 = vmov 0  }
 0x10b   : > { %2113 = vmatprep.subr.bf16.mxu1 %v2422_v50  ;;  %829 = vmatprep.mubr.bf16.mxu0 %v2423_v51  ;;  %v2236_v52 = vld [vmem:[%s2933_s2 + $0x1c] ss:$12 sps:$4 sm:$0xff]   ;;  %vm2424_vm1 = vmmov 0   ;;  %v2238_v53 = vld [vmem:[%s2933_s2 + $0x18] ss:$12 sps:$4 sm:$0xff]   ;;  %s1569_s16 = sshra.s32 %s2409_s30, 3 }
 0x10c   : > { %797 = vmatprep.subr.bf16.mxu0 %v2233_v48  ;;  %2129 = vmatprep.mubr.msk.bf16.mxu1 %vm2424_vm1, %v2422_v50  ;;  %v2239_v54 = vld [vmem:[%s2933_s2 + $0x34] ss:$12 sps:$4 sm:$0xff]   ;;  %v2241_v55 = vld [vmem:[%s2933_s2 + $0x30] ss:$12 sps:$4 sm:$0xff]   ;;  %v2242_v56 = vld [vmem:[%s2933_s2 + $0x4c] ss:$12 sps:$4 sm:$0xff]  }
 0x10d   : > { %798 = vmatpush1.bf16.msra.mxu0 %v2235_v49  ;;  %v2253_v57 = vld [vmem:[%s2933_s2 + $0x8] ss:$12 sps:$4 sm:$0xff]   ;;  %v2245_v59 = vld [vmem:[%s2933_s2 + $0x64] ss:$12 sps:$4 sm:$0xff]   ;;  %v2257_v60 = vld [vmem:[%s2933_s2 + $0x20] ss:$12 sps:$4 sm:$0xff]  }
 0x10e   : > { %799 = vmatprep.subr.bf16.mxu0 %v2236_v52  ;;  %v2244_v58 = vld [vmem:[%s2933_s2 + $0x48] ss:$12 sps:$4 sm:$0xff]   ;;  %2114 = vmatpush3.bf16.msra.mxu1 %v2253_v57  ;;  %v2247_v61 = vld [vmem:[%s2933_s2 + $0x60] ss:$12 sps:$4 sm:$0xff]   ;;  %v2259_v62 = vld [vmem:[%s2933_s2 + $0x38] ss:$12 sps:$4 sm:$0xff]  }
 0x10f   : > { %2115 = vmatprep.subr.bf16.mxu1 %v2422_v50  ;;  %v2248_v63 = vld [vmem:[%s2933_s2 + $0x7c] ss:$12 sps:$4 sm:$0xff]   ;;  %v2250_v0 = vld [vmem:[%s2933_s2 + $0x78] ss:$12 sps:$4 sm:$0xff]   ;;  %v2251_v2 = vld [vmem:[%s2933_s2 + $0x94] ss:$12 sps:$4 sm:$0xff]  }
 0x110   : > { %v2263_v1 = vld [vmem:[%s2933_s2 + $0x50] ss:$12 sps:$4 sm:$0xff]   ;;  %v2267_v4 = vld [vmem:[%s2933_s2 + $0x68] ss:$12 sps:$4 sm:$0xff]   ;;  %v2255_v5 = vld [vmem:[%s2933_s2 + $0xac] ss:$12 sps:$4 sm:$0xff]  }
 0x111   : > { %800 = vmatpush1.bf16.msra.mxu0 %v2238_v53  ;;  %v2254_v3 = vld [vmem:[%s2933_s2 + $0x90] ss:$12 sps:$4 sm:$0xff]   ;;  %v2258_v6 = vld [vmem:[%s2933_s2 + $0xa8] ss:$12 sps:$4 sm:$0xff]   ;;  %v631_v7 = vld [vmem:[%s2505_s18] sm:$0xff]  ;;  %s1572_s17 = sand.u32 7, %s2409_s30 }
 0x112   : > { %801 = vmatprep.subr.bf16.mxu0 %v2239_v54  ;;  %2116 = vmatpush3.bf16.msra.mxu1 %v2257_v60  ;;  %v2271_v8 = vld [vmem:[%s2933_s2 + $0x80] ss:$12 sps:$4 sm:$0xff]   ;;  %v2262_v9 = vld [vmem:[%s2936_s5 + $0x4] ss:$12 sps:$4 sm:$0xff]   ;;  %v632_v10 = vpack.c.bf16 %v631_v7, %v631_v7  ;;  %v2266_v13 = vld [vmem:[%s2936_s5 + $0x1c] ss:$12 sps:$4 sm:$0xff]  }
 0x113   : > { %2117 = vmatprep.subr.bf16.mxu1 %v2422_v50  ;;  %v2260_v11 = vld [vmem:[%s2936_s5] ss:$12 sps:$4 sm:$0xff]   ;;  %v2275_v12 = vld [vmem:[%s2933_s2 + $0x98] ss:$12 sps:$4 sm:$0xff]   ;;  %v2279_v15 = vld [vmem:[%s2933_s2 + $0xb0] ss:$12 sps:$4 sm:$0xff]  }
 0x114   : > { %v2264_v14 = vld [vmem:[%s2936_s5 + $0x18] ss:$12 sps:$4 sm:$0xff]   ;;  %v2270_v16 = vld [vmem:[%s2936_s5 + $0x34] ss:$12 sps:$4 sm:$0xff]   ;;  %v2268_v17 = vld [vmem:[%s2936_s5 + $0x30] ss:$12 sps:$4 sm:$0xff]  }
 0x115   : > { %802 = vmatpush1.bf16.msra.mxu0 %v2241_v55  ;;  %v2274_v18 = vld [vmem:[%s2936_s5 + $0x4c] ss:$12 sps:$4 sm:$0xff]   ;;  %v2286_v19 = vld [vmem:[%s2936_s5 + $0x8] ss:$12 sps:$4 sm:$0xff]   ;;  %v2278_v22 = vld [vmem:[%s2936_s5 + $0x64] ss:$12 sps:$4 sm:$0xff]  }
 0x116   : > { %803 = vmatprep.subr.bf16.mxu0 %v2242_v56  ;;  %2118 = vmatpush3.bf16.msra.mxu1 %v2259_v62  ;;  %v2272_v20 = vld [vmem:[%s2936_s5 + $0x48] ss:$12 sps:$4 sm:$0xff]   ;;  %v2290_v21 = vld [vmem:[%s2936_s5 + $0x20] ss:$12 sps:$4 sm:$0xff]   ;;  %v2291_v24 = vld [vmem:[%s2936_s5 + $0x38] ss:$12 sps:$4 sm:$0xff]  }
 0x117   : > { %2119 = vmatprep.subr.bf16.mxu1 %v2422_v50  ;;  %v2276_v23 = vld [vmem:[%s2936_s5 + $0x60] ss:$12 sps:$4 sm:$0xff]   ;;  %v2282_v25 = vld [vmem:[%s2936_s5 + $0x7c] ss:$12 sps:$4 sm:$0xff]   ;;  %v2280_v26 = vld [vmem:[%s2936_s5 + $0x78] ss:$12 sps:$4 sm:$0xff]  }
 0x118   : > { %v2292_v27 = vld [vmem:[%s2936_s5 + $0x50] ss:$12 sps:$4 sm:$0xff]   ;;  %v2285_v28 = vld [vmem:[%s2936_s5 + $0x94] ss:$12 sps:$4 sm:$0xff]   ;;  %v2289_v31 = vld [vmem:[%s2936_s5 + $0xac] ss:$12 sps:$4 sm:$0xff]  }
 0x119   : > { %804 = vmatpush1.bf16.msra.mxu0 %v2244_v58  ;;  %v2283_v29 = vld [vmem:[%s2936_s5 + $0x90] ss:$12 sps:$4 sm:$0xff]   ;;  %v2293_v30 = vld [vmem:[%s2936_s5 + $0x68] ss:$12 sps:$4 sm:$0xff]   ;;  %v2741_v33 = vld [vmem:[#allocation2] sm:$0xff]  ;;  %s2049_s19 = sshll.u32 %s1569_s16, 5 }
 0x11a   : > { %805 = vmatprep.subr.bf16.mxu0 %v2245_v59  ;;  %2120 = vmatpush3.bf16.msra.mxu1 %v2263_v1  ;;  %v2287_v32 = vld [vmem:[%s2936_s5 + $0xa8] ss:$12 sps:$4 sm:$0xff]   ;;  %v2294_v34 = vld [vmem:[%s2936_s5 + $0x80] ss:$12 sps:$4 sm:$0xff]   ;;  %v878_v35 = vpack.c.bf16 %v2741_v33, %v2741_v33  ;;  %v2295_v36 = vld [vmem:[%s2936_s5 + $0x98] ss:$12 sps:$4 sm:$0xff]   ;;  %s1575_s20 = sadd.s32 %s2049_s19, %s1572_s17 }
 0x11b   : > { %2121 = vmatprep.subr.bf16.mxu1 %v2422_v50  ;;  %v2296_v37 = vld [vmem:[%s2936_s5 + $0xb0] ss:$12 sps:$4 sm:$0xff]   ;;  %v2299_v38 = vld [vmem:[%s2938_s7 + $0x4] ss:$16 sps:$4 sm:$0xff]   ;;  %v2300_v41 = vld [vmem:[%s2938_s7 + $0x8] ss:$16 sps:$4 sm:$0xff]  }
 0x11c   : > { %v2302_v39 = vld [vmem:[%s2938_s7 + $0xc] ss:$16 sps:$4 sm:$0xff]   ;;  %v2297_v40 = vld [vmem:[%s2938_s7] ss:$16 sps:$4 sm:$0xff]   ;;  %v2305_v43 = vld [vmem:[%s2938_s7 + $0x24] ss:$16 sps:$4 sm:$0xff]  }
 0x11d   : > { %806 = vmatpush1.bf16.msra.mxu0 %v2247_v61  ;;  %v2303_v42 = vld [vmem:[%s2938_s7 + $0x20] ss:$16 sps:$4 sm:$0xff]   ;;  %v2306_v44 = vld [vmem:[%s2938_s7 + $0x28] ss:$16 sps:$4 sm:$0xff]   ;;  %v2308_v45 = vld [vmem:[%s2938_s7 + $0x2c] ss:$16 sps:$4 sm:$0xff]  }
 0x11e   : > { %807 = vmatprep.subr.bf16.mxu0 %v2248_v63  ;;  %2122 = vmatpush3.bf16.msra.mxu1 %v2267_v4  ;;  %v2311_v46 = vld [vmem:[%s2938_s7 + $0x44] ss:$16 sps:$4 sm:$0xff]   ;;  %v2314_v47 = vld [vmem:[%s2938_s7 + $0x4c] ss:$16 sps:$4 sm:$0xff]   ;;  %v2309_v48 = vld [vmem:[%s2938_s7 + $0x40] ss:$16 sps:$4 sm:$0xff]  }
 0x11f   : > { %2123 = vmatprep.subr.bf16.mxu1 %v2422_v50  ;;  %v2312_v49 = vld [vmem:[%s2938_s7 + $0x48] ss:$16 sps:$4 sm:$0xff]   ;;  %v2315_v52 = vld [vmem:[%s2938_s7 + $0x60] ss:$16 sps:$4 sm:$0xff]   ;;  %v2323_v54 = vld [vmem:[%s2938_s7 + $0x84] ss:$16 sps:$4 sm:$0xff]  }
 0x120   : > { %v2318_v53 = vld [vmem:[%s2938_s7 + $0x68] ss:$16 sps:$4 sm:$0xff]   ;;  %v2326_v55 = vld [vmem:[%s2938_s7 + $0x8c] ss:$16 sps:$4 sm:$0xff]   ;;  %v2321_v56 = vld [vmem:[%s2938_s7 + $0x80] ss:$16 sps:$4 sm:$0xff]  }
 0x121   : > { %808 = vmatpush1.bf16.msra.mxu0 %v2250_v0  ;;  %v2324_v57 = vld [vmem:[%s2938_s7 + $0x88] ss:$16 sps:$4 sm:$0xff]   ;;  %v2329_v58 = vld [vmem:[%s2938_s7 + $0xa4] ss:$16 sps:$4 sm:$0xff]   ;;  %v2332_v59 = vld [vmem:[%s2938_s7 + $0xac] ss:$16 sps:$4 sm:$0xff]  }
 0x122   : > { %809 = vmatprep.subr.bf16.mxu0 %v2251_v2  ;;  %2124 = vmatpush3.bf16.msra.mxu1 %v2271_v8  ;;  %v2327_v60 = vld [vmem:[%s2938_s7 + $0xa0] ss:$16 sps:$4 sm:$0xff]   ;;  %v2330_v61 = vld [vmem:[%s2938_s7 + $0xa8] ss:$16 sps:$4 sm:$0xff]   ;;  %v2335_v62 = vld [vmem:[%s2938_s7 + $0xc4] ss:$16 sps:$4 sm:$0xff]  }
 0x123   : > { %2125 = vmatprep.subr.bf16.mxu1 %v2422_v50  ;;  %v2338_v63 = vld [vmem:[%s2938_s7 + $0xcc] ss:$16 sps:$4 sm:$0xff]   ;;  %v2333_v0 = vld [vmem:[%s2938_s7 + $0xc0] ss:$16 sps:$4 sm:$0xff]   ;;  %v2336_v1 = vld [vmem:[%s2938_s7 + $0xc8] ss:$16 sps:$4 sm:$0xff]  }
 0x124   : > { %v2341_v2 = vld [vmem:[%s2938_s7 + $0xe4] ss:$16 sps:$4 sm:$0xff]   ;;  %v2339_v4 = vld [vmem:[%s2938_s7 + $0xe0] ss:$16 sps:$4 sm:$0xff]   ;;  %s1576_s21 = scalar_lea.vmem [#allocation4], %s1575_s20  ;;  %p2028_p6 = scmp.ne.s32.totalorder %s2409_s30, 7 }
 0x125   : > { %810 = vmatpush1.bf16.msra.mxu0 %v2254_v3  ;;  %v2344_v3 = vld [vmem:[%s2938_s7 + $0xec] ss:$16 sps:$4 sm:$0xff]  }
 0x126   : > { %811 = vmatprep.subr.bf16.mxu0 %v2255_v5  ;;  %2126 = vmatpush3.bf16.msra.mxu1 %v2275_v12  ;;  %v2342_v5 = vld [vmem:[%s2938_s7 + $0xe8] ss:$16 sps:$4 sm:$0xff]  }
 0x127   : > { %2127 = vmatprep.subr.bf16.mxu1 %v2422_v50 }
 0x129   : > { %812 = vmatpush1.bf16.msra.mxu0 %v2258_v6 }
 0x12a   : > { %1056 = vmatprep.subr.bf16.mxu0 %v2262_v9  ;;  %2128 = vmatpush3.bf16.msra.mxu1 %v2279_v15 }
 0x12b   : > { %2133 = vmatprep.subr.bf16.mxu1 %v2422_v50 }
 0x12c   : > { %830 = vmatmul.mubr.bf16.vlgmr.msra.gmra.mrb[0].mxu0 %v632_v10 }
 0x12d   : > { %1057 = vmatpush1.bf16.msra.mxu0 %v2260_v11  ;;  %1088 = vmatprep.mubr.bf16.mxu0 %v2423_v51 }
 0x12e   : > { %1058 = vmatprep.subr.bf16.mxu0 %v2266_v13  ;;  %2130 = vmatmul.mubr.bf16.vlgmr.msra.gmra.mrb[0].mxu1 %v632_v10  ;;  %v913_v10 = vlaneseq  ;;  %v911_v13 = vld [vmem:[%s2937_s6] sm:$0x7] }
 0x12f   : > { %2134 = vmatpush3.bf16.msra.mxu1 %v2286_v19  ;;  %2149 = vmatprep.mubr.msk.bf16.mxu1 %vm2424_vm1, %v2422_v50  ;;  %v667_v19 = vld [vmem:[#allocation3 + $0x8] sm:$0xff] }
 0x130   : > { %2135 = vmatprep.subr.bf16.mxu1 %v2422_v50  ;;  %v2856_v11 = vshrl.u32 %v913_v10, 7  ;;  %vm2873_vm2 = vcmp.lt.s32.totalorder %v913_v10, 512 }
 0x131   : > { %1059 = vmatpush1.bf16.msra.mxu0 %v2264_v14 }
 0x132   : > { %1060 = vmatprep.subr.bf16.mxu0 %v2270_v16  ;;  %v915_v12 = vsub.s32 0, %v2856_v11  ;;  %v919_v14 = vsub.s32 1, %v2856_v11  ;;  %v666_v16 = vld [vmem:[#allocation3] sm:$0xff] }
 0x133   : > { %2136 = vmatpush3.bf16.msra.mxu1 %v2290_v21 }
 0x134   : > { %2137 = vmatprep.subr.bf16.mxu1 %v2422_v50  ;;  %v916_v15 = vrot.slane %v911_v13, %v915_v12 }
 0x135   : > { %1061 = vmatpush1.bf16.msra.mxu0 %v2268_v17  ;;  %v920_v17 = vrot.slane %v911_v13, %v919_v14 }
 0x136   : > { %1062 = vmatprep.subr.bf16.mxu0 %v2274_v18  ;;  %v2153_v18 = vadd.f32 %v916_v15, %v666_v16 }
 0x137   : > { %2138 = vmatpush3.bf16.msra.mxu1 %v2291_v24  ;;  %v2155_v21 = vadd.f32 %v920_v17, %v667_v19 }
 0x138   : > { %2139 = vmatprep.subr.bf16.mxu1 %v2422_v50 }
 0x139   : > { %1063 = vmatpush1.bf16.msra.mxu0 %v2272_v20 }
 0x13a   : > { %1064 = vmatprep.subr.bf16.mxu0 %v2278_v22 }
 0x13b   : > { %2140 = vmatpush3.bf16.msra.mxu1 %v2292_v27 }
 0x13c   : > { %2141 = vmatprep.subr.bf16.mxu1 %v2422_v50 }
 0x13d   : > { %1065 = vmatpush1.bf16.msra.mxu0 %v2276_v23 }
 0x13e   : > { %1066 = vmatprep.subr.bf16.mxu0 %v2282_v25 }
 0x13f   : > { %2142 = vmatpush3.bf16.msra.mxu1 %v2293_v30 }
 0x140   : > { %2143 = vmatprep.subr.bf16.mxu1 %v2422_v50 }
 0x141   : > { %1067 = vmatpush1.bf16.msra.mxu0 %v2280_v26 }
 0x142   : > { %1068 = vmatprep.subr.bf16.mxu0 %v2285_v28 }
 0x143   : > { %2144 = vmatpush3.bf16.msra.mxu1 %v2294_v34 }
 0x144   : > { %2145 = vmatprep.subr.bf16.mxu1 %v2422_v50 }
 0x145   : > { %1069 = vmatpush1.bf16.msra.mxu0 %v2283_v29 }
 0x146   : > { %1070 = vmatprep.subr.bf16.mxu0 %v2289_v31 }
 0x147   : > { %2146 = vmatpush3.bf16.msra.mxu1 %v2295_v36  ;;  %v923_v36 = vsub.s32 2, %v2856_v11 }
 0x148   : > { %2147 = vmatprep.subr.bf16.mxu1 %v2422_v50  ;;  %v2317_v50 = vld [vmem:[%s2938_s7 + $0x64] ss:$16 sps:$4 sm:$0xff]  }
 0x149   : > { %1071 = vmatpush1.bf16.msra.mxu0 %v2287_v32 }
 0x14a   : > { %1374 = vmatprep.subr.bf16.mxu0 %v2299_v38 }
 0x14b   : > { %2148 = vmatpush3.bf16.msra.mxu1 %v2296_v37  ;;  %v924_v37 = vrot.slane %v911_v13, %v923_v36 }
 0x14c   : > { %1089 = vmatmul.mubr.bf16.vlgmr.msra.gmra.mrb[0].mxu0 %v878_v35  ;;  %1415 = vmatprep.subr.bf16.mxu1 %v2302_v39 }
 0x14d   : > { %1406 = vmatprep.mubr.bf16.mxu0 %v2423_v51  ;;  %1375 = vmatpush1.bf16.msra.mxu0 %v2297_v40 }
 0x14e   : > { %2150 = vmatmul.mubr.bf16.vlgmr.msra.gmra.mrb[4].mxu1 %v878_v35  ;;  %1376 = vmatprep.subr.bf16.mxu0 %v2305_v43 }
 0x14f   : > { %1447 = vmatprep.mubr.bf16.mxu1 %v2423_v51  ;;  %1416 = vmatpush1.bf16.msra.mxu1 %v2300_v41  ;;  %v2320_v51 = vld [vmem:[%s2938_s7 + $0x6c] ss:$16 sps:$4 sm:$0xff]  }
 0x150   : > { %1417 = vmatprep.subr.bf16.mxu1 %v2308_v45  ;;  %v668_v41 = vld [vmem:[#allocation3 + $0x10] sm:$0xff] }
 0x151   : > { %1377 = vmatpush1.bf16.msra.mxu0 %v2303_v42 }
 0x152   : > { %1378 = vmatprep.subr.bf16.mxu0 %v2311_v46 }
 0x153   : > { %1418 = vmatpush1.bf16.msra.mxu1 %v2306_v44 }
 0x154   : > { %1419 = vmatprep.subr.bf16.mxu1 %v2314_v47 }
 0x155   : > { %1379 = vmatpush1.bf16.msra.mxu0 %v2309_v48 }
 0x156   : > { %1380 = vmatprep.subr.bf16.mxu0 %v2317_v50 }
 0x157   : > { %1420 = vmatpush1.bf16.msra.mxu1 %v2312_v49 }
 0x158   : > { %1421 = vmatprep.subr.bf16.mxu1 %v2320_v51 }
 0x159   : > { %1381 = vmatpush1.bf16.msra.mxu0 %v2315_v52 }
 0x15a   : > { %1382 = vmatprep.subr.bf16.mxu0 %v2323_v54  ;;  %v1208_v54 = vsub.s32 3, %v2856_v11 }
 0x15b   : > { %1422 = vmatpush1.bf16.msra.mxu1 %v2318_v53  ;;  %v1192_v53 = vld [vmem:[%s2939_s8] sm:$0xf] }
 0x15c   : > { %1423 = vmatprep.subr.bf16.mxu1 %v2326_v55  ;;  %v1197_v55 = vrot.slane %v1192_v53, %v915_v12 }
 0x15d   : > { %1383 = vmatpush1.bf16.msra.mxu0 %v2321_v56  ;;  %v1205_v56 = vrot.slane %v1192_v53, %v923_v36 }
 0x15e   : > { %1384 = vmatprep.subr.bf16.mxu0 %v2329_v58  ;;  %v1209_v58 = vrot.slane %v1192_v53, %v1208_v54 }
 0x15f   : > { %1424 = vmatpush1.bf16.msra.mxu1 %v2324_v57  ;;  %v1201_v57 = vrot.slane %v1192_v53, %v919_v14 }
 0x160   : > { %1425 = vmatprep.subr.bf16.mxu1 %v2332_v59 }
 0x161   : > { %1385 = vmatpush1.bf16.msra.mxu0 %v2327_v60 }
 0x162   : > { %1386 = vmatprep.subr.bf16.mxu0 %v2335_v62 }
 0x163   : > { %1426 = vmatpush1.bf16.msra.mxu1 %v2330_v61 }
 0x164   : > { %1427 = vmatprep.subr.bf16.mxu1 %v2338_v63 }
 0x165   : > { %1387 = vmatpush1.bf16.msra.mxu0 %v2333_v0 }
 0x166   : > { %1388 = vmatprep.subr.bf16.mxu0 %v2341_v2 }
 0x167   : > { %1428 = vmatpush1.bf16.msra.mxu1 %v2336_v1 }
 0x168   : > { %1429 = vmatprep.subr.bf16.mxu1 %v2344_v3 }
 0x169   : > { %1389 = vmatpush1.bf16.msra.mxu0 %v2339_v4 }
 0x16b   : > { %1430 = vmatpush1.bf16.msra.mxu1 %v2342_v5 }
 0x201   : > { %v872_v6 = vpop.f32.mrb[0].mxu1 }
 0x202   : > { %v2131_v7 = vpop.f32.mrb[1].mxu1  ;;  %v873_v43 = vadd.f32 %v872_v6, %v668_v41 }
 0x203   : > { %v875_v8 = vpop.f32.mrb[2].mxu1 }
 0x204   : > { %v2132_v9 = vpop.f32.mrb[3].mxu1 }
 0x21f   : > { %v1090_v20 = vpop.f32.mrb[0].mxu0 }
 0x220   : > { %v2154_v22 = vadd.f32 %v2153_v18, %v1090_v20  ;;  %v1092_v23 = vpop.f32.mrb[1].mxu0 }
 0x221   : > { %v1094_v24 = vpop.f32.mrb[2].mxu0  ;;  %v2156_v27 = vadd.f32 %v2155_v21, %v1092_v23  ;;  %v1131_v29 = vpop.f32.mrb[4].mxu1 }
 0x222   : > { %v1978_v25 = vmul.f32 -1.442695, %v2154_v22  ;;  %v1095_v26 = vpop.f32.mrb[3].mxu0  ;;  %v2151_v30 = vpop.f32.mrb[5].mxu1  ;;  %v1132_v40 = vadd.f32 %v1131_v29, %v924_v37 }
 0x223   : > { %v1979_v28 = vmul.f32 -1.442695, %v2156_v27  ;;  %v1134_v31 = vpop.f32.mrb[6].mxu1 }
 0x224   : > { %2345 = vpow2.f32 %v1978_v25  ;;  %v2152_v32 = vpop.f32.mrb[7].mxu1 }
 0x225   : > { %2347 = vpow2.f32 %v1979_v28  ;;  %v2425_v28 = vmov 1966171168  }
 0x226   : > { %v1494_v29 = vunpack.c.l.s4 %v2425_v28 }
 0x228   : > { %v1495_v31 = vunpack.c.0.s8 %v1494_v29 }
 0x22e   : > { %v2346_v34 = vpop.eup %2345 }
 0x22f   : > { %v1141_v35 = vadd.f32 1.0, %v2346_v34  ;;  %v2348_v38 = vpop.eup %2347 }
 0x230   : > { %v1148_v39 = vadd.f32 1.0, %v2348_v38 }
 0x231   : > { %2349 = vrcp.f32 %v1141_v35  ;;  %v1498_v35 = vsub.s32 %v1495_v31, %v2856_v11 }
 0x232   : > { %2351 = vrcp.f32 %v1148_v39 }
 0x23b   : > { %v2350_v42 = vpop.eup %2349 }
 0x23c   : > { %v1151_v44 = vmul.f32 %v2350_v42, %v1132_v40  ;;  %v2352_v46 = vpop.eup %2351 }
 0x23d   : > { %v1154_v47 = vsub.f32 1.0, %v2352_v46  ;;  %v1156_v50 = vmul.f32 %v2352_v46, %v2741_v33 }
 0x23e   : > { %v1152_v45 = vadd.f32 %v1151_v44, %v873_v43 }
 0x240   : > { %2353 = vtanh.f32 %v1152_v45 }
 0x24a   : > { %v2354_v48 = vpop.eup %2353 }
 0x24b   : > { %v1155_v49 = vmul.f32 %v2354_v48, %v1154_v47 }
 0x24d   : > { %v1157_v51 = vadd.f32 %v1156_v50, %v1155_v49 }
 0x24f   : > { %1158 = vst [vmem:[#allocation2] sm:$0xff] %v1157_v51  ;;  %v1159_v52 = vpack.c.bf16 %v1157_v51, %v1157_v51 }
 0x251   : > { %1407 = vmatmul.mubr.bf16.vlgmr.msra.gmra.mrb[4].mxu0 %v1159_v52  ;;  %1448 = vmatmul.mubr.bf16.vlgmr.msra.gmra.mrb[8].mxu1 %v1159_v52 }
 0x324   : > { %v1408_v59 = vpop.f32.mrb[4].mxu0  ;;  %v1449_v60 = vpop.f32.mrb[8].mxu1 }
 0x325   : > { %v1409_v61 = vadd.f32 %v1408_v59, %v1197_v55  ;;  %v1450_v62 = vadd.f32 %v1449_v60, %v1205_v56  ;;  %v1410_v33 = vpop.f32.mrb[5].mxu0  ;;  %v1451_v63 = vpop.f32.mrb[9].mxu1 }
 0x326   : > { %v1411_v0 = vadd.f32 %v1410_v33, %v1201_v57  ;;  %v1452_v1 = vadd.f32 %v1451_v63, %v1209_v58  ;;  %v1412_v2 = vpop.f32.mrb[6].mxu0  ;;  %v1453_v3 = vpop.f32.mrb[10].mxu1 }
 0x327   : > { %v1413_v4 = vpop.f32.mrb[7].mxu0  ;;  %v1454_v5 = vpop.f32.mrb[11].mxu1 }
 0x328   : > { %v1456_v6 = vmax.f32 %v1409_v61, %v1411_v0  ;;  %v1457_v7 = vmax.f32 %v1450_v62, %v1452_v1 }
 0x32a   : > { %v1458_v8 = vmax.f32 %v1456_v6, %v1457_v7 }
 0x32c   : > { %1459 = vmax.xlane.f32.xlu0 %v1458_v8 }
 0x3b9   : > { %v1460_v9 = vpop.xlane.xlu0 %1459 }
 0x3ba   : > { %v1461_v12 = vsub.f32 %v1409_v61, %v1460_v9  ;;  %v1462_v13 = vsub.f32 %v1411_v0, %v1460_v9  ;;  %v1463_v14 = vsub.f32 %v1450_v62, %v1460_v9  ;;  %v1464_v15 = vsub.f32 %v1452_v1, %v1460_v9 }
 0x3bc   : > { %v1465_v16 = vmul.f32 1.442695, %v1461_v12  ;;  %v1467_v17 = vmul.f32 1.442695, %v1462_v13  ;;  %v1469_v18 = vmul.f32 1.442695, %v1463_v14 }
 0x3bd   : > { %v1471_v19 = vmul.f32 1.442695, %v1464_v15 }
 0x3be   : > { %2355 = vpow2.f32 %v1465_v16 }
 0x3bf   : > { %2357 = vpow2.f32 %v1467_v17 }
 0x3c0   : > { %2359 = vpow2.f32 %v1469_v18 }
 0x3c1   : > { %2361 = vpow2.f32 %v1471_v19 }
 0x3c8   : > { %v2356_v20 = vpop.eup %2355 }
 0x3c9   : > { %v2358_v21 = vpop.eup %2357 }
 0x3ca   : > { %v1473_v22 = vadd.f32 %v2358_v21, %v2356_v20  ;;  %v2360_v23 = vpop.eup %2359 }
 0x3cb   : > { %v2362_v25 = vpop.eup %2361 }
 0x3cc   : > { %v1474_v24 = vadd.f32 %v2360_v23, %v1473_v22 }
 0x3ce   : > { %v1475_v26 = vadd.f32 %v2362_v25, %v1474_v24 }
 0x3d0   : > { %1476 = vadd.xlane.f32.xlu0 %v1475_v26 }
 0x45d   : > { %v1477_v27 = vpop.xlane.xlu0 %1476 }
 0x45e   : > { %2363 = vlog2.f32 %v1477_v27 }
 0x468   : > { %v2364_v30 = vpop.eup %2363 }
 0x469   : > { %v1479_v32 = vmul.f32 0.6931472, %v2364_v30 }
 0x46b   : > { %v1480_v34 = vadd.f32 %v1479_v32, %v1460_v9 }
 0x46d   : > { %v1481_v36 = vsub.f32 %v1409_v61, %v1480_v34  ;;  %v1482_v37 = vsub.f32 %v1411_v0, %v1480_v34  ;;  %v1483_v38 = vsub.f32 %v1450_v62, %v1480_v34  ;;  %v1484_v39 = vsub.f32 %v1452_v1, %v1480_v34 }
 0x46f   : > { %v1489_v40 = vcombine.low %v1481_v36, %v1482_v37  ;;  %v1490_v41 = vcombine.high %v1481_v36, %v1482_v37  ;;  %v1491_v42 = vcombine.low %v1483_v38, %v1484_v39  ;;  %v1492_v43 = vcombine.high %v1483_v38, %v1484_v39 }
 0x471   : > { %v1499_v44 = vrot.slane %v1489_v40, %v1498_v35  ;;  %v1506_v45 = vrot.slane %v1490_v41, %v1498_v35  ;;  %v1513_v46 = vrot.slane %v1491_v42, %v1498_v35  ;;  %v1520_v47 = vrot.slane %v1492_v43, %v1498_v35 }
 0x473   : > { %v1521_v48 = vcombine.low %v1499_v44, %v1513_v46  ;;  %v1522_v49 = vcombine.high %v1499_v44, %v1513_v46  ;;  %v1523_v50 = vcombine.low %v1506_v45, %v1520_v47  ;;  %v1524_v51 = vcombine.high %v1506_v45, %v1520_v47 }
 0x475   : > { %v1531_v52 = vrot.slane %v1521_v48, %v1498_v35  ;;  %v1538_v53 = vrot.slane %v1523_v50, %v1498_v35  ;;  %v1545_v54 = vrot.slane %v1522_v49, %v1498_v35  ;;  %v1552_v55 = vrot.slane %v1524_v51, %v1498_v35  ;;  %1610 = sbr.rel (%p2028_p6) target bundleno = 1169 (0x491), region = 64 }
 0x477   : > { %v1553_v56 = vcombine.high %v1531_v52, %v1531_v52  ;;  %v1554_v57 = vcombine.high %v1538_v53, %v1538_v53  ;;  %v1555_v58 = vcombine.high %v1545_v54, %v1545_v54  ;;  %v1556_v59 = vcombine.high %v1552_v55, %v1552_v55  ;;  %1577 = vst.msk [vmem:[%s1576_s21] ss:$8 sm:$0xf] %vm2873_vm2, %v1531_v52 }
 0x478   : > { %2015 = vst.msk [vmem:[%s1576_s21 + $0x20] ss:$8 sm:$0xf] %vm2873_vm2, %v1545_v54  ;;  %2021 = vst.msk [vmem:[%s1576_s21 + $0x80] ss:$8 sm:$0xf] %vm2873_vm2, %v1538_v53 }
 0x479   : > { %2023 = vst.msk [vmem:[%s1576_s21 + $0xa0] ss:$8 sm:$0xf] %vm2873_vm2, %v1552_v55  ;;  %2017 = vst.msk [vmem:[%s1576_s21 + $0x40] ss:$8 sm:$0xf] %vm2873_vm2, %v1553_v56 }
 0x47a   : > { %2019 = vst.msk [vmem:[%s1576_s21 + $0x60] ss:$8 sm:$0xf] %vm2873_vm2, %v1555_v58  ;;  %2025 = vst.msk [vmem:[%s1576_s21 + $0xc0] ss:$8 sm:$0xf] %vm2873_vm2, %v1554_v57 }
 0x47b   : > { %2027 = vst.msk [vmem:[%s1576_s21 + $0xe0] ss:$8 sm:$0xf] %vm2873_vm2, %v1556_v59 }
 0x482   : > { %v1611_v10 = vld [vmem:[#allocation4] sm:$0xff]  ;;  %v1612_v60 = vld [vmem:[#allocation4 + $0x8] sm:$0xff]  ;;  %v1613_v61 = vld [vmem:[#allocation4 + $0x10] sm:$0xff] }
 0x483   : > { %v2050_v62 = vpack.c.bf16 %v1612_v60, %v1611_v10  ;;  %v1614_v33 = vld [vmem:[#allocation4 + $0x18] sm:$0xff]  ;;  %v1615_v63 = vld [vmem:[#allocation4 + $0x20] sm:$0xff]  ;;  %v1616_v0 = vld [vmem:[#allocation4 + $0x28] sm:$0xff] }
 0x484   : > { %v2051_v1 = vpack.c.bf16 %v1614_v33, %v1613_v61  ;;  %v2052_v2 = vpack.c.bf16 %v1616_v0, %v1615_v63  ;;  %v1617_v3 = vld [vmem:[#allocation4 + $0x30] sm:$0xff]  ;;  %v1618_v4 = vld [vmem:[#allocation4 + $0x38] sm:$0xff]  ;;  %v1619_v5 = vld [vmem:[#allocation4 + $0x40] sm:$0xff] }
 0x485   : > { %1771 = vst [vmem:[#allocation5] sm:$0xff] %v2050_v62  ;;  %v2053_v6 = vpack.c.bf16 %v1618_v4, %v1617_v3  ;;  %v1620_v7 = vld [vmem:[#allocation4 + $0x48] sm:$0xff]  ;;  %v1621_v8 = vld [vmem:[#allocation4 + $0x50] sm:$0xff]  ;;  %v1622_v9 = vld [vmem:[#allocation4 + $0x58] sm:$0xff] }
 0x486   : > { %1772 = vst [vmem:[#allocation5 + $0x8] sm:$0xff] %v2051_v1  ;;  %1773 = vst [vmem:[#allocation5 + $0x10] sm:$0xff] %v2052_v2  ;;  %v2054_v12 = vpack.c.bf16 %v1620_v7, %v1619_v5  ;;  %v2055_v13 = vpack.c.bf16 %v1622_v9, %v1621_v8  ;;  %v1623_v14 = vld [vmem:[#allocation4 + $0x60] sm:$0xff]  ;;  %v1624_v15 = vld [vmem:[#allocation4 + $0x68] sm:$0xff] }
 0x487   : > { %v1625_v16 = vld [vmem:[#allocation4 + $0x70] sm:$0xff]  ;;  %1774 = vst [vmem:[#allocation5 + $0x18] sm:$0xff] %v2053_v6  ;;  %v2056_v17 = vpack.c.bf16 %v1624_v15, %v1623_v14  ;;  %v1626_v18 = vld [vmem:[#allocation4 + $0x78] sm:$0xff]  ;;  %v1627_v19 = vld [vmem:[#allocation4 + $0x80] sm:$0xff] }
 0x488   : > { %v1628_v20 = vld [vmem:[#allocation4 + $0x88] sm:$0xff]  ;;  %1775 = vst [vmem:[#allocation5 + $0x20] sm:$0xff] %v2054_v12  ;;  %1776 = vst [vmem:[#allocation5 + $0x28] sm:$0xff] %v2055_v13  ;;  %v2057_v21 = vpack.c.bf16 %v1626_v18, %v1625_v16  ;;  %v1629_v23 = vld [vmem:[#allocation4 + $0x90] sm:$0xff] }
 0x489   : > { %v2058_v22 = vpack.c.bf16 %v1628_v20, %v1627_v19  ;;  %v1630_v24 = vld [vmem:[#allocation4 + $0x98] sm:$0xff]  ;;  %v1631_v25 = vld [vmem:[#allocation4 + $0xa0] sm:$0xff]  ;;  %1777 = vst [vmem:[#allocation5 + $0x30] sm:$0xff] %v2056_v17  ;;  %v1632_v27 = vld [vmem:[#allocation4 + $0xa8] sm:$0xff] }
 0x48a   : > { %v2059_v26 = vpack.c.bf16 %v1630_v24, %v1629_v23  ;;  %v1633_v28 = vld [vmem:[#allocation4 + $0xb0] sm:$0xff]  ;;  %v1634_v29 = vld [vmem:[#allocation4 + $0xb8] sm:$0xff]  ;;  %1778 = vst [vmem:[#allocation5 + $0x38] sm:$0xff] %v2057_v21  ;;  %v2060_v30 = vpack.c.bf16 %v1632_v27, %v1631_v25  ;;  %v1635_v32 = vld [vmem:[#allocation4 + $0xc0] sm:$0xff] }
 0x48b   : > { %1779 = vst [vmem:[#allocation5 + $0x40] sm:$0xff] %v2058_v22  ;;  %v2061_v31 = vpack.c.bf16 %v1634_v29, %v1633_v28  ;;  %v1636_v34 = vld [vmem:[#allocation4 + $0xc8] sm:$0xff]  ;;  %v1637_v35 = vld [vmem:[#allocation4 + $0xd0] sm:$0xff]  ;;  %v1638_v37 = vld [vmem:[#allocation4 + $0xd8] sm:$0xff] }
 0x48c   : > { %1780 = vst [vmem:[#allocation5 + $0x48] sm:$0xff] %v2059_v26  ;;  %v2062_v36 = vpack.c.bf16 %v1636_v34, %v1635_v32  ;;  %v1639_v38 = vld [vmem:[#allocation4 + $0xe0] sm:$0xff]  ;;  %v1640_v39 = vld [vmem:[#allocation4 + $0xe8] sm:$0xff]  ;;  %1781 = vst [vmem:[#allocation5 + $0x50] sm:$0xff] %v2060_v30  ;;  %v2063_v40 = vpack.c.bf16 %v1638_v37, %v1637_v35 }
 0x48d   : > { %1782 = vst [vmem:[#allocation5 + $0x58] sm:$0xff] %v2061_v31  ;;  %v2064_v41 = vpack.c.bf16 %v1640_v39, %v1639_v38  ;;  %v1641_v42 = vld [vmem:[#allocation4 + $0xf0] sm:$0xff]  ;;  %v1642_v43 = vld [vmem:[#allocation4 + $0xf8] sm:$0xff] }
 0x48e   : > { %1783 = vst [vmem:[#allocation5 + $0x60] sm:$0xff] %v2062_v36  ;;  %v2065_v44 = vpack.c.bf16 %v1642_v43, %v1641_v42  ;;  %1784 = vst [vmem:[#allocation5 + $0x68] sm:$0xff] %v2063_v40 }
 0x48f   : > { %1785 = vst [vmem:[#allocation5 + $0x70] sm:$0xff] %v2064_v41 }
 0x490   : > { %1786 = vst [vmem:[#allocation5 + $0x78] sm:$0xff] %v2065_v44 }
 0x491 PF: > { %p2896_p7 = scmp.eq.s32.totalorder %s1899_s12, 7  ;;  %s2426_s22 = smov [#allocation5]  }
 0x492   : > { %s1797_s23 = sshll.u32 %s2426_s22, 4  ;;  %s1798_s23 = int_to_ptr.vmem [resolvable:$true] %s1797_s23 }
 0x493   : > { %s2365_s24 = scalar_lea.vmem %s1798_s23, 2048  ;;  %p2372_p11 = scmp.lt.s32.totalorder %s1798_s23, %s1798_s23 }
 0x494   : > { %p2366_p8 = scmp.ne.s32.totalorder %s1798_s23, %s2365_s24  ;;  %p2373_p12 = scmp.lt.s32.totalorder %s2365_s24, %s2365_s24 }
 0x496   : > { %p2367_p9 = pnand %p2366_p8, %p2896_p7  ;;  %p2374_p13 = por %p2373_p12, %p2372_p11 }
 0x498   : > { %p2368_p10 = pneg %p2367_p9 }
 0x49a   : > { %p2375_p0 = pnand %p2374_p13, %p2368_p10 }
 0x49c   : > { %2378 = shalt.err (!%p2375_p0)
}
 0x49d   : > { %s2379_s12 = scalar_lea.hbm %s2940_s9, 2048 }
 0x49e   : > { %p2380_p1 = scmp.ne.s32.totalorder %s2940_s9, %s2379_s12  ;;  %p2385_p4 = scmp.lt.u32.totalorder %s2379_s12, %s2940_s9 }
 0x4a0   : > { %p2381_p2 = pnand %p2380_p1, %p2896_p7 }
 0x4a2   : > { %p2382_p3 = pneg %p2381_p2 }
 0x4a4   : > { %p2387_p5 = pnand %p2385_p4, %p2382_p3 }
 0x4a6   : > { %2390 = shalt.err (!%p2387_p5)
}
 0x4a7   : > { %s2427_s14 = smov 256   ;;  %s2428_s15 = smov 16  }
 0x4a8   : > { %2162 = dma.vmem_to_hbm [thread:$0]  (%p2896_p7), %s1798_s23, 2048, %s2940_s9, [#allocation6], %s2427_s14, %s2427_s14, %s2428_s15  }
 0x4a9   : > { %2404 = dma.done.wait (%p2896_p7), [#allocation6], 2048  }
 0x4aa   : > { %2406 = vsyncadd (%p2896_p7), [#allocation6], 4294965248 }
 0x4ab PF: > { %s20_s11 = sadd.s32 1, %s2417_s11   ;;  %s2944_s30 = smov %s2413_s10 }
 0x4ac   : > { %p17_p6 = scmp.ge.s32.totalorder %s20_s11, 10   ;;  %s2945_s10 = smov %s2947_s13 }
 0x4ae   :  { %19 = sbr.rel (!%p17_p6) target bundleno = 2 (0x2), region = 103 }
 0x4b5   :  { %1813 = vsyncpa [#allocation6], 1 }
 0x4b6   :  { %1815 = vsyncpa [#allocation6 + $0x1], 1 }

</bundles_post_ra>
